<compile_context>
chip_gen: v7x
topology: tpu7x:2x2x1
jax: 0.10.0
libtpu: 0.0.40
codegen_flags: <defaults>
</compile_context>

<pallas_src>
import jax
import jax.numpy as jnp
import numpy as np
from jax.experimental import pallas as pl
from jax.experimental.pallas import tpu as pltpu

LEAKY_SLOPE = 0.01   # nn.LeakyReLU default
BN_EPS = 1e-5        # nn.BatchNorm2d default


def _build_kernel(N, CIN, COUT, H, W):
    """Returns (kernel, scratch_shapes, smat, dmat, cmat) for the fused forward pass."""
    HO, WO = H // 2, W // 2
    WP1 = W + 2
    P1 = (H + 2) * WP1                        # padded stage-1 plane (per sample)
    L1 = (N - 1) * P1 + (H - 1) * WP1 + W     # span of all stride-1 conv1 output lanes
    WP2 = WO + 2
    P2 = (HO + 2) * WP2                       # padded stage-2/3 plane (per sample)
    L2 = (N - 1) * P2 + (HO - 1) * WP2 + WO   # span of all conv2/conv3 output lanes
    NVALID = float(N * HO * WO)

    # ---- tiny host-built 0/1 matrices (baked constants, ride an otherwise idle MXU) -------
    # pad-scatter: (CIN, H*W) @ smat -> zero-padded (CIN, P1) plane
    smat = np.zeros((H * W, P1), np.float32)
    for i in range(H):
        smat[i * W:(i + 1) * W, (i + 1) * WP1 + 1:(i + 1) * WP1 + 1 + W] = np.eye(W, dtype=np.float32)
    # stride-2 select (even rows/cols) + repack into zero-padded stage-2 layout
    dmat = np.zeros((L1, N * P2), np.float32)
    # compaction: padded-span lanes -> dense (n, ho, wo) output lanes
    cmat = np.zeros((L2, N * HO * WO), np.float32)
    for n in range(N):
        for ho in range(HO):
            for wo in range(WO):
                dmat[n * P1 + 2 * ho * WP1 + 2 * wo, n * P2 + (ho + 1) * WP2 + (wo + 1)] = 1.0
                cmat[n * P2 + ho * WP2 + wo, n * HO * WO + ho * WO + wo] = 1.0

    def kernel(x_ref, w1_ref, w2a_ref, w2b_ref, p_ref, smat_ref, dmat_ref, cmat_ref,
               o_ref, xpad_ref, x2_ref, bn_ref, col1_ref, col2_ref):
        f32 = jnp.float32
        b1, b2a = p_ref[:, 0:1], p_ref[:, 1:2]
        gam, beta, b2b = p_ref[:, 2:3], p_ref[:, 3:4], p_ref[:, 4:5]

        # ---- stage 1: Conv2d(CIN->COUT, 3x3, stride=2, pad=1) + ReLU -----------------------
        sp = smat_ref[...]
        for n in range(N):                       # one pad-scatter matmul + one wide store / sample
            xpad_ref[:, n * P1:(n + 1) * P1] = jnp.dot(
                x_ref[n * CIN:(n + 1) * CIN, :], sp, preferred_element_type=f32)
        xp = xpad_ref[...]                       # (CIN, N*P1), pad ring = 0 everywhere
        for kh in range(3):                      # im2col stack: 9 shifted slices, formed once
            for kw in range(3):
                t = kh * 3 + kw
                s = kh * WP1 + kw
                col1_ref[t * CIN:(t + 1) * CIN, :] = xp[:, s:s + L1]
        r = jnp.maximum(jnp.dot(w1_ref[...], col1_ref[...],
                                preferred_element_type=f32) + b1, 0.0)      # (COUT, L1)

        # stride-2 decimation + pad-ring repack: ONE 0/1 matmul, ONE full-width store
        x2_ref[...] = jnp.dot(r, dmat_ref[...], preferred_element_type=f32)  # (COUT, N*P2)
        x2 = x2_ref[...]

        # valid-lane mask (exactly N*HO*WO ones), generated in-kernel from an iota
        lane = jax.lax.broadcasted_iota(jnp.int32, (1, L2), 1).astype(f32)
        rem = lane - jnp.floor(lane / P2) * P2
        row = jnp.floor(rem / WP2)
        col = rem - row * WP2
        msk = jnp.where((row < HO) & (col < WO), 1.0, 0.0).astype(f32)       # (1, L2)

        # ---- stage 2: Conv2d(3x3, s=1, p=1) + LeakyReLU + BatchNorm (batch stats) ----------
        for kh in range(3):
            for kw in range(3):
                t = kh * 3 + kw
                s = kh * WP2 + kw
                col2_ref[t * COUT:(t + 1) * COUT, :] = x2[:, s:s + L2]
        tpre = jnp.dot(w2a_ref[...], col2_ref[...], preferred_element_type=f32) + b2a
        tpre = jnp.where(tpre > 0, tpre, LEAKY_SLOPE * tpre)                 # LeakyReLU
        tm = tpre * msk
        mean = jnp.sum(tm, axis=1, keepdims=True) * (1.0 / NVALID)
        ex2 = jnp.sum(tm * tpre, axis=1, keepdims=True) * (1.0 / NVALID)     # E[x^2] (masked)
        var = ex2 - mean * mean                                              # biased, 1 pass
        scale = gam * jax.lax.rsqrt(var + BN_EPS)
        shift = beta - mean * scale
        bnv = (tpre * scale + shift) * msk
        # TODO(synk): nn.BatchNorm2d also updates running_mean/running_var; forward output is
        # identical, but expose mean/var as extra (COUT,1) outputs if stateful parity is needed.

        # repack BN output into the padded layout for stage 3 (pad ring / junk lanes -> 0)
        bn_ref[...] = jnp.zeros((COUT, N * P2), f32)
        bn_ref[:, WP2 + 1:WP2 + 1 + L2] = bnv
        bnp = bn_ref[...]

        # ---- stage 3: Conv2d(3x3, s=1, p=1) + residual add ---------------------------------
        for kh in range(3):
            for kw in range(3):
                t = kh * 3 + kw
                s = kh * WP2 + kw
                col2_ref[t * COUT:(t + 1) * COUT, :] = bnp[:, s:s + L2]      # reuse im2col scratch
        y = (jnp.dot(w2b_ref[...], col2_ref[...], preferred_element_type=f32)
             + b2b + x2[:, WP2 + 1:WP2 + 1 + L2])                            # + residual (x2)

        # ---- lane-dense output: (COUT, N*HO*WO) = one unmasked vreg store ------------------
        o_ref[...] = jnp.dot(y, cmat_ref[...], preferred_element_type=f32)

    scratch = [pltpu.VMEM((CIN, N * P1), jnp.float32),     # padded input, all samples
               pltpu.VMEM((COUT, N * P2), jnp.float32),    # padded x2 (residual source)
               pltpu.VMEM((COUT, N * P2), jnp.float32),    # padded BN output
               pltpu.VMEM((9 * CIN, L1), jnp.float32),     # stage-1 im2col stack
               pltpu.VMEM((9 * COUT, L2), jnp.float32)]    # stage-2/3 im2col stack (reused)
    return kernel, scratch, smat, dmat, cmat


def _pack_weight(w):   # HWIO (3,3,Cin,Cout) -> (Cout, 9*Cin), tap-major columns
    cout = w.shape[-1]
    return jnp.transpose(w, (3, 0, 1, 2)).reshape(cout, -1).astype(jnp.float32)


@jax.jit
def residual_conv2d_forward(x_nchw, params):
    w1, b1, w2a, b2a, gamma, beta, w2b, b2b = params
    N, CIN, H, W = x_nchw.shape
    COUT = w1.shape[-1]
    HO, WO = H // 2, W // 2

    kernel, scratch, smat, dmat, cmat = _build_kernel(N, CIN, COUT, H, W)

    x_in = x_nchw.astype(jnp.float32).reshape(N * CIN, H * W)   # free reshape of NCHW
    pvec = jnp.stack([b1, b2a, gamma, beta, b2b], axis=1).astype(jnp.float32)  # (COUT, 5)

    vmem = pl.BlockSpec(memory_space=pltpu.MemorySpace.VMEM)
    out = pl.pallas_call(
        kernel,
        out_shape=jax.ShapeDtypeStruct((COUT, N * HO * WO), jnp.float32),
        in_specs=[vmem] * 8,
        out_specs=vmem,
        scratch_shapes=scratch,
    )(x_in, _pack_weight(w1), _pack_weight(w2a), _pack_weight(w2b), pvec,
      jnp.asarray(smat), jnp.asarray(dmat), jnp.asarray(cmat))

    # tiny (4 KB) lane-dense -> NCHW permute done by XLA in the wrapper
    return jnp.transpose(out.reshape(COUT, N, HO, WO), (1, 0, 2, 3))


def init_params(key, in_channels, out_channels):
    k1, k2, k3, k4, k5, k6 = jax.random.split(key, 6)
    s1 = 1.0 / (in_channels * 9) ** 0.5
    s2 = 1.0 / (out_channels * 9) ** 0.5
    w1 = jax.random.uniform(k1, (3, 3, in_channels, out_channels), jnp.float32, -s1, s1)
    b1 = jax.random.uniform(k2, (out_channels,), jnp.float32, -s1, s1)
    w2a = jax.random.uniform(k3, (3, 3, out_channels, out_channels), jnp.float32, -s2, s2)
    b2a = jax.random.uniform(k4, (out_channels,), jnp.float32, -s2, s2)
    gamma = jnp.ones((out_channels,), jnp.float32)    # BatchNorm2d default init
    beta = jnp.zeros((out_channels,), jnp.float32)
    w2b = jax.random.uniform(k5, (3, 3, out_channels, out_channels), jnp.float32, -s2, s2)
    b2b = jax.random.uniform(k6, (out_channels,), jnp.float32, -s2, s2)
    return (w1, b1, w2a, b2a, gamma, beta, w2b, b2b)


# ---- pure-JAX reference (for correctness check only) -----------------------------------
def _conv_ref(x, w, b, stride):
    y = jax.lax.conv_general_dilated(x, w, (stride, stride), ((1, 1), (1, 1)),
                                     dimension_numbers=("NHWC", "HWIO", "NHWC"))
    return y + b.reshape(1, 1, 1, -1)


def reference_forward(x_nchw, params):
    w1, b1, w2a, b2a, gamma, beta, w2b, b2b = params
    x = jnp.transpose(x_nchw, (0, 2, 3, 1)).astype(jnp.float32)
    x2 = jnp.maximum(_conv_ref(x, w1, b1, 2), 0.0)
    t = _conv_ref(x2, w2a, b2a, 1)
    t = jnp.where(t > 0, t, LEAKY_SLOPE * t)
    mean = jnp.mean(t, axis=(0, 1, 2), keepdims=True)
    var = jnp.mean(jnp.square(t - mean), axis=(0, 1, 2), keepdims=True)
    tbn = (t - mean) * jax.lax.rsqrt(var + BN_EPS) * gamma.reshape(1, 1, 1, -1) \
        + beta.reshape(1, 1, 1, -1)
    x3 = _conv_ref(tbn, w2b, b2b, 1)
    return jnp.transpose(x2 + x3, (0, 3, 1, 2))


if __name__ == "__main__":
    key = jax.random.PRNGKey(0)
    kx, kp = jax.random.split(key)
    in_channels, out_channels = 4, 8          # in <= out -> Conv2d(stride=2) branch
    x = jax.random.normal(kx, (2, in_channels, 16, 16), jnp.float32)   # NCHW like PyTorch
    params = init_params(kp, in_channels, out_channels)

    out = jax.block_until_ready(residual_conv2d_forward(x, params))
    assert out.shape == (2, out_channels, 8, 8), out.shape

    ref = reference_forward(x, params)
    err = float(jnp.max(jnp.abs(out - ref)))
    assert jnp.allclose(out, ref, atol=1e-3, rtol=1e-3), err

    print("KERNEL_OK")
</pallas_src>

<mosaic_0001>
module attributes {stable_mosaic.version = 11 : i64} {
  func.func @kernel(%arg0: memref<8x256xf32, #tpu.memory_space<vmem>>, %arg1: memref<8x36xf32, #tpu.memory_space<vmem>>, %arg2: memref<8x72xf32, #tpu.memory_space<vmem>>, %arg3: memref<8x72xf32, #tpu.memory_space<vmem>>, %arg4: memref<8x5xf32, #tpu.memory_space<vmem>>, %arg5: memref<256x324xf32, #tpu.memory_space<vmem>>, %arg6: memref<610x200xf32, #tpu.memory_space<vmem>>, %arg7: memref<178x128xf32, #tpu.memory_space<vmem>>, %arg8: memref<8x128xf32, #tpu.memory_space<vmem>>, %arg9: memref<4x648xf32, #tpu.memory_space<vmem>>, %arg10: memref<8x200xf32, #tpu.memory_space<vmem>>, %arg11: memref<8x200xf32, #tpu.memory_space<vmem>>, %arg12: memref<36x610xf32, #tpu.memory_space<vmem>>, %arg13: memref<72x178xf32, #tpu.memory_space<vmem>>) attributes {dimension_semantics = [], scalar_prefetch = 0 : i64, scratch_operands = 5 : i64, tpu.core_type = #tpu.core_type<tc>} {
    %c0 = arith.constant 0 : index
    %c0_0 = arith.constant 0 : index
    %0 = vector.load %arg4[%c0, %c0_0] : memref<8x5xf32, #tpu.memory_space<vmem>>, vector<8x1xf32>
    %c0_1 = arith.constant 0 : index
    %c1 = arith.constant 1 : index
    %1 = vector.load %arg4[%c0_1, %c1] : memref<8x5xf32, #tpu.memory_space<vmem>>, vector<8x1xf32>
    %c0_2 = arith.constant 0 : index
    %c2 = arith.constant 2 : index
    %2 = vector.load %arg4[%c0_2, %c2] : memref<8x5xf32, #tpu.memory_space<vmem>>, vector<8x1xf32>
    %c0_3 = arith.constant 0 : index
    %c3 = arith.constant 3 : index
    %3 = vector.load %arg4[%c0_3, %c3] : memref<8x5xf32, #tpu.memory_space<vmem>>, vector<8x1xf32>
    %c0_4 = arith.constant 0 : index
    %c4 = arith.constant 4 : index
    %4 = vector.load %arg4[%c0_4, %c4] : memref<8x5xf32, #tpu.memory_space<vmem>>, vector<8x1xf32>
    %c0_5 = arith.constant 0 : index
    %c0_6 = arith.constant 0 : index
    %5 = vector.load %arg5[%c0_5, %c0_6] : memref<256x324xf32, #tpu.memory_space<vmem>>, vector<256x324xf32>
    %c0_7 = arith.constant 0 : index
    %c0_8 = arith.constant 0 : index
    %6 = vector.load %arg0[%c0_7, %c0_8] : memref<8x256xf32, #tpu.memory_space<vmem>>, vector<4x256xf32>
    %cst = arith.constant dense<0.000000e+00> : vector<4x324xf32>
    %7 = tpu.matmul %6, %5, %cst {dimension_numbers = #tpu.dot_dimension_numbers<[1], [0], [0], [1], [0, 0, 1, 1], [], []>} : vector<4x256xf32>, vector<256x324xf32>, vector<4x324xf32> -> vector<4x324xf32>
    %c0_9 = arith.constant 0 : index
    %c0_10 = arith.constant 0 : index
    %8 = vector.load %arg9[%c0_9, %c0_10] : memref<4x648xf32, #tpu.memory_space<vmem>>, vector<4x324xf32>
    tpu.vector_store %arg9[%c0_9, %c0_10], %7 {strides = array<i32>} : memref<4x648xf32, #tpu.memory_space<vmem>>, vector<4x324xf32>,
    %c4_11 = arith.constant 4 : index
    %c0_12 = arith.constant 0 : index
    %9 = vector.load %arg0[%c4_11, %c0_12] : memref<8x256xf32, #tpu.memory_space<vmem>>, vector<4x256xf32>
    %cst_13 = arith.constant dense<0.000000e+00> : vector<4x324xf32>
    %10 = tpu.matmul %9, %5, %cst_13 {dimension_numbers = #tpu.dot_dimension_numbers<[1], [0], [0], [1], [0, 0, 1, 1], [], []>} : vector<4x256xf32>, vector<256x324xf32>, vector<4x324xf32> -> vector<4x324xf32>
    %c0_14 = arith.constant 0 : index
    %c324 = arith.constant 324 : index
    %11 = vector.load %arg9[%c0_14, %c324] : memref<4x648xf32, #tpu.memory_space<vmem>>, vector<4x324xf32>
    tpu.vector_store %arg9[%c0_14, %c324], %10 {strides = array<i32>} : memref<4x648xf32, #tpu.memory_space<vmem>>, vector<4x324xf32>,
    %c0_15 = arith.constant 0 : index
    %c0_16 = arith.constant 0 : index
    %12 = vector.load %arg9[%c0_15, %c0_16] : memref<4x648xf32, #tpu.memory_space<vmem>>, vector<4x648xf32>
    %13 = vector.extract_strided_slice %12 {offsets = [0, 0], sizes = [4, 610], strides = [1, 1]} : vector<4x648xf32> to vector<4x610xf32>
    %c0_17 = arith.constant 0 : index
    %c0_18 = arith.constant 0 : index
    %14 = vector.load %arg12[%c0_17, %c0_18] : memref<36x610xf32, #tpu.memory_space<vmem>>, vector<4x610xf32>
    tpu.vector_store %arg12[%c0_17, %c0_18], %13 {strides = array<i32>} : memref<36x610xf32, #tpu.memory_space<vmem>>, vector<4x610xf32>,
    %15 = vector.extract_strided_slice %12 {offsets = [0, 1], sizes = [4, 610], strides = [1, 1]} : vector<4x648xf32> to vector<4x610xf32>
    %c4_19 = arith.constant 4 : index
    %c0_20 = arith.constant 0 : index
    %16 = vector.load %arg12[%c4_19, %c0_20] : memref<36x610xf32, #tpu.memory_space<vmem>>, vector<4x610xf32>
    tpu.vector_store %arg12[%c4_19, %c0_20], %15 {strides = array<i32>} : memref<36x610xf32, #tpu.memory_space<vmem>>, vector<4x610xf32>,
    %17 = vector.extract_strided_slice %12 {offsets = [0, 2], sizes = [4, 610], strides = [1, 1]} : vector<4x648xf32> to vector<4x610xf32>
    %c8 = arith.constant 8 : index
    %c0_21 = arith.constant 0 : index
    %18 = vector.load %arg12[%c8, %c0_21] : memref<36x610xf32, #tpu.memory_space<vmem>>, vector<4x610xf32>
    tpu.vector_store %arg12[%c8, %c0_21], %17 {strides = array<i32>} : memref<36x610xf32, #tpu.memory_space<vmem>>, vector<4x610xf32>,
    %19 = vector.extract_strided_slice %12 {offsets = [0, 18], sizes = [4, 610], strides = [1, 1]} : vector<4x648xf32> to vector<4x610xf32>
    %c12 = arith.constant 12 : index
    %c0_22 = arith.constant 0 : index
    %20 = vector.load %arg12[%c12, %c0_22] : memref<36x610xf32, #tpu.memory_space<vmem>>, vector<4x610xf32>
    tpu.vector_store %arg12[%c12, %c0_22], %19 {strides = array<i32>} : memref<36x610xf32, #tpu.memory_space<vmem>>, vector<4x610xf32>,
    %21 = vector.extract_strided_slice %12 {offsets = [0, 19], sizes = [4, 610], strides = [1, 1]} : vector<4x648xf32> to vector<4x610xf32>
    %c16 = arith.constant 16 : index
    %c0_23 = arith.constant 0 : index
    %22 = vector.load %arg12[%c16, %c0_23] : memref<36x610xf32, #tpu.memory_space<vmem>>, vector<4x610xf32>
    tpu.vector_store %arg12[%c16, %c0_23], %21 {strides = array<i32>} : memref<36x610xf32, #tpu.memory_space<vmem>>, vector<4x610xf32>,
    %23 = vector.extract_strided_slice %12 {offsets = [0, 20], sizes = [4, 610], strides = [1, 1]} : vector<4x648xf32> to vector<4x610xf32>
    %c20 = arith.constant 20 : index
    %c0_24 = arith.constant 0 : index
    %24 = vector.load %arg12[%c20, %c0_24] : memref<36x610xf32, #tpu.memory_space<vmem>>, vector<4x610xf32>
    tpu.vector_store %arg12[%c20, %c0_24], %23 {strides = array<i32>} : memref<36x610xf32, #tpu.memory_space<vmem>>, vector<4x610xf32>,
    %25 = vector.extract_strided_slice %12 {offsets = [0, 36], sizes = [4, 610], strides = [1, 1]} : vector<4x648xf32> to vector<4x610xf32>
    %c24 = arith.constant 24 : index
    %c0_25 = arith.constant 0 : index
    %26 = vector.load %arg12[%c24, %c0_25] : memref<36x610xf32, #tpu.memory_space<vmem>>, vector<4x610xf32>
    tpu.vector_store %arg12[%c24, %c0_25], %25 {strides = array<i32>} : memref<36x610xf32, #tpu.memory_space<vmem>>, vector<4x610xf32>,
    %27 = vector.extract_strided_slice %12 {offsets = [0, 37], sizes = [4, 610], strides = [1, 1]} : vector<4x648xf32> to vector<4x610xf32>
    %c28 = arith.constant 28 : index
    %c0_26 = arith.constant 0 : index
    %28 = vector.load %arg12[%c28, %c0_26] : memref<36x610xf32, #tpu.memory_space<vmem>>, vector<4x610xf32>
    tpu.vector_store %arg12[%c28, %c0_26], %27 {strides = array<i32>} : memref<36x610xf32, #tpu.memory_space<vmem>>, vector<4x610xf32>,
    %29 = vector.extract_strided_slice %12 {offsets = [0, 38], sizes = [4, 610], strides = [1, 1]} : vector<4x648xf32> to vector<4x610xf32>
    %c32 = arith.constant 32 : index
    %c0_27 = arith.constant 0 : index
    %30 = vector.load %arg12[%c32, %c0_27] : memref<36x610xf32, #tpu.memory_space<vmem>>, vector<4x610xf32>
    tpu.vector_store %arg12[%c32, %c0_27], %29 {strides = array<i32>} : memref<36x610xf32, #tpu.memory_space<vmem>>, vector<4x610xf32>,
    %c0_28 = arith.constant 0 : index
    %c0_29 = arith.constant 0 : index
    %31 = vector.load %arg1[%c0_28, %c0_29] : memref<8x36xf32, #tpu.memory_space<vmem>>, vector<8x36xf32>
    %c0_30 = arith.constant 0 : index
    %c0_31 = arith.constant 0 : index
    %32 = vector.load %arg12[%c0_30, %c0_31] : memref<36x610xf32, #tpu.memory_space<vmem>>, vector<36x610xf32>
    %cst_32 = arith.constant dense<0.000000e+00> : vector<8x610xf32>
    %33 = tpu.matmul %31, %32, %cst_32 {dimension_numbers = #tpu.dot_dimension_numbers<[1], [0], [0], [1], [0, 0, 1, 1], [], []>} : vector<8x36xf32>, vector<36x610xf32>, vector<8x610xf32> -> vector<8x610xf32>
    %34 = vector.broadcast %0 : vector<8x1xf32> to vector<8x610xf32>
    %35 = arith.addf %33, %34 : vector<8x610xf32>
    %cst_33 = arith.constant 0.000000e+00 : f32
    %36 = vector.broadcast %cst_33 : f32 to vector<8x610xf32>
    %37 = arith.maximumf %35, %36 : vector<8x610xf32>
    %c0_34 = arith.constant 0 : index
    %c0_35 = arith.constant 0 : index
    %38 = vector.load %arg6[%c0_34, %c0_35] : memref<610x200xf32, #tpu.memory_space<vmem>>, vector<610x200xf32>
    %cst_36 = arith.constant dense<0.000000e+00> : vector<8x200xf32>
    %39 = tpu.matmul %37, %38, %cst_36 {dimension_numbers = #tpu.dot_dimension_numbers<[1], [0], [0], [1], [0, 0, 1, 1], [], []>} : vector<8x610xf32>, vector<610x200xf32>, vector<8x200xf32> -> vector<8x200xf32>
    %c0_37 = arith.constant 0 : index
    %c0_38 = arith.constant 0 : index
    %40 = vector.load %arg10[%c0_37, %c0_38] : memref<8x200xf32, #tpu.memory_space<vmem>>, vector<8x200xf32>
    tpu.vector_store %arg10[%c0_37, %c0_38], %39 {strides = array<i32>} : memref<8x200xf32, #tpu.memory_space<vmem>>, vector<8x200xf32>,
    %c0_39 = arith.constant 0 : index
    %c0_40 = arith.constant 0 : index
    %41 = vector.load %arg10[%c0_39, %c0_40] : memref<8x200xf32, #tpu.memory_space<vmem>>, vector<8x200xf32>
    %42 = tpu.iota {dimensions = array<i32: 1>} : vector<1x178xi32>
    %43 = arith.sitofp %42 : vector<1x178xi32> to vector<1x178xf32>
    %cst_41 = arith.constant 1.000000e+02 : f32
    %44 = vector.broadcast %cst_41 : f32 to vector<1x178xf32>
    %45 = arith.divf %43, %44 : vector<1x178xf32>
    %46 = math.floor %45 : vector<1x178xf32>
    %cst_42 = arith.constant 1.000000e+02 : f32
    %47 = vector.broadcast %cst_42 : f32 to vector<1x178xf32>
    %48 = arith.mulf %46, %47 : vector<1x178xf32>
    %49 = arith.subf %43, %48 : vector<1x178xf32>
    %cst_43 = arith.constant 1.000000e+01 : f32
    %50 = vector.broadcast %cst_43 : f32 to vector<1x178xf32>
    %51 = arith.divf %49, %50 : vector<1x178xf32>
    %52 = math.floor %51 : vector<1x178xf32>
    %cst_44 = arith.constant 1.000000e+01 : f32
    %53 = vector.broadcast %cst_44 : f32 to vector<1x178xf32>
    %54 = arith.mulf %52, %53 : vector<1x178xf32>
    %55 = arith.subf %49, %54 : vector<1x178xf32>
    %cst_45 = arith.constant 8.000000e+00 : f32
    %56 = vector.broadcast %cst_45 : f32 to vector<1x178xf32>
    %57 = arith.cmpf olt, %52, %56 : vector<1x178xf32>
    %cst_46 = arith.constant 8.000000e+00 : f32
    %58 = vector.broadcast %cst_46 : f32 to vector<1x178xf32>
    %59 = arith.cmpf olt, %55, %58 : vector<1x178xf32>
    %60 = arith.andi %57, %59 : vector<1x178xi1>
    %cst_47 = arith.constant 1.000000e+00 : f32
    %cst_48 = arith.constant 0.000000e+00 : f32
    %61 = vector.broadcast %cst_47 : f32 to vector<1x178xf32>
    %62 = vector.broadcast %cst_48 : f32 to vector<1x178xf32>
    %63 = arith.select %60, %61, %62 : vector<1x178xi1>, vector<1x178xf32>
    %64 = vector.extract_strided_slice %41 {offsets = [0, 0], sizes = [8, 178], strides = [1, 1]} : vector<8x200xf32> to vector<8x178xf32>
    %c0_49 = arith.constant 0 : index
    %c0_50 = arith.constant 0 : index
    %65 = vector.load %arg13[%c0_49, %c0_50] : memref<72x178xf32, #tpu.memory_space<vmem>>, vector<8x178xf32>
    tpu.vector_store %arg13[%c0_49, %c0_50], %64 {strides = array<i32>} : memref<72x178xf32, #tpu.memory_space<vmem>>, vector<8x178xf32>,
    %66 = vector.extract_strided_slice %41 {offsets = [0, 1], sizes = [8, 178], strides = [1, 1]} : vector<8x200xf32> to vector<8x178xf32>
    %c8_51 = arith.constant 8 : index
    %c0_52 = arith.constant 0 : index
    %67 = vector.load %arg13[%c8_51, %c0_52] : memref<72x178xf32, #tpu.memory_space<vmem>>, vector<8x178xf32>
    tpu.vector_store %arg13[%c8_51, %c0_52], %66 {strides = array<i32>} : memref<72x178xf32, #tpu.memory_space<vmem>>, vector<8x178xf32>,
    %68 = vector.extract_strided_slice %41 {offsets = [0, 2], sizes = [8, 178], strides = [1, 1]} : vector<8x200xf32> to vector<8x178xf32>
    %c16_53 = arith.constant 16 : index
    %c0_54 = arith.constant 0 : index
    %69 = vector.load %arg13[%c16_53, %c0_54] : memref<72x178xf32, #tpu.memory_space<vmem>>, vector<8x178xf32>
    tpu.vector_store %arg13[%c16_53, %c0_54], %68 {strides = array<i32>} : memref<72x178xf32, #tpu.memory_space<vmem>>, vector<8x178xf32>,
    %70 = vector.extract_strided_slice %41 {offsets = [0, 10], sizes = [8, 178], strides = [1, 1]} : vector<8x200xf32> to vector<8x178xf32>
    %c24_55 = arith.constant 24 : index
    %c0_56 = arith.constant 0 : index
    %71 = vector.load %arg13[%c24_55, %c0_56] : memref<72x178xf32, #tpu.memory_space<vmem>>, vector<8x178xf32>
    tpu.vector_store %arg13[%c24_55, %c0_56], %70 {strides = array<i32>} : memref<72x178xf32, #tpu.memory_space<vmem>>, vector<8x178xf32>,
    %72 = vector.extract_strided_slice %41 {offsets = [0, 11], sizes = [8, 178], strides = [1, 1]} : vector<8x200xf32> to vector<8x178xf32>
    %c32_57 = arith.constant 32 : index
    %c0_58 = arith.constant 0 : index
    %73 = vector.load %arg13[%c32_57, %c0_58] : memref<72x178xf32, #tpu.memory_space<vmem>>, vector<8x178xf32>
    tpu.vector_store %arg13[%c32_57, %c0_58], %72 {strides = array<i32>} : memref<72x178xf32, #tpu.memory_space<vmem>>, vector<8x178xf32>,
    %74 = vector.extract_strided_slice %41 {offsets = [0, 12], sizes = [8, 178], strides = [1, 1]} : vector<8x200xf32> to vector<8x178xf32>
    %c40 = arith.constant 40 : index
    %c0_59 = arith.constant 0 : index
    %75 = vector.load %arg13[%c40, %c0_59] : memref<72x178xf32, #tpu.memory_space<vmem>>, vector<8x178xf32>
    tpu.vector_store %arg13[%c40, %c0_59], %74 {strides = array<i32>} : memref<72x178xf32, #tpu.memory_space<vmem>>, vector<8x178xf32>,
    %76 = vector.extract_strided_slice %41 {offsets = [0, 20], sizes = [8, 178], strides = [1, 1]} : vector<8x200xf32> to vector<8x178xf32>
    %c48 = arith.constant 48 : index
    %c0_60 = arith.constant 0 : index
    %77 = vector.load %arg13[%c48, %c0_60] : memref<72x178xf32, #tpu.memory_space<vmem>>, vector<8x178xf32>
    tpu.vector_store %arg13[%c48, %c0_60], %76 {strides = array<i32>} : memref<72x178xf32, #tpu.memory_space<vmem>>, vector<8x178xf32>,
    %78 = vector.extract_strided_slice %41 {offsets = [0, 21], sizes = [8, 178], strides = [1, 1]} : vector<8x200xf32> to vector<8x178xf32>
    %c56 = arith.constant 56 : index
    %c0_61 = arith.constant 0 : index
    %79 = vector.load %arg13[%c56, %c0_61] : memref<72x178xf32, #tpu.memory_space<vmem>>, vector<8x178xf32>
    tpu.vector_store %arg13[%c56, %c0_61], %78 {strides = array<i32>} : memref<72x178xf32, #tpu.memory_space<vmem>>, vector<8x178xf32>,
    %80 = vector.extract_strided_slice %41 {offsets = [0, 22], sizes = [8, 178], strides = [1, 1]} : vector<8x200xf32> to vector<8x178xf32>
    %c64 = arith.constant 64 : index
    %c0_62 = arith.constant 0 : index
    %81 = vector.load %arg13[%c64, %c0_62] : memref<72x178xf32, #tpu.memory_space<vmem>>, vector<8x178xf32>
    tpu.vector_store %arg13[%c64, %c0_62], %80 {strides = array<i32>} : memref<72x178xf32, #tpu.memory_space<vmem>>, vector<8x178xf32>,
    %c0_63 = arith.constant 0 : index
    %c0_64 = arith.constant 0 : index
    %82 = vector.load %arg2[%c0_63, %c0_64] : memref<8x72xf32, #tpu.memory_space<vmem>>, vector<8x72xf32>
    %c0_65 = arith.constant 0 : index
    %c0_66 = arith.constant 0 : index
    %83 = vector.load %arg13[%c0_65, %c0_66] : memref<72x178xf32, #tpu.memory_space<vmem>>, vector<72x178xf32>
    %cst_67 = arith.constant dense<0.000000e+00> : vector<8x178xf32>
    %84 = tpu.matmul %82, %83, %cst_67 {dimension_numbers = #tpu.dot_dimension_numbers<[1], [0], [0], [1], [0, 0, 1, 1], [], []>} : vector<8x72xf32>, vector<72x178xf32>, vector<8x178xf32> -> vector<8x178xf32>
    %85 = vector.broadcast %1 : vector<8x1xf32> to vector<8x178xf32>
    %86 = arith.addf %84, %85 : vector<8x178xf32>
    %cst_68 = arith.constant 0.000000e+00 : f32
    %87 = vector.broadcast %cst_68 : f32 to vector<8x178xf32>
    %88 = arith.cmpf ogt, %86, %87 : vector<8x178xf32>
    %cst_69 = arith.constant 0.00999999977 : f32
    %89 = vector.broadcast %cst_69 : f32 to vector<8x178xf32>
    %90 = arith.mulf %89, %86 : vector<8x178xf32>
    %91 = arith.select %88, %86, %90 : vector<8x178xi1>, vector<8x178xf32>
    %92 = vector.broadcast %63 : vector<1x178xf32> to vector<8x178xf32>
    %93 = arith.mulf %91, %92 : vector<8x178xf32>
    %cst_70 = arith.constant dense<0.000000e+00> : vector<8xf32>
    %94 = vector.multi_reduction <add>, %93, %cst_70 [1] : vector<8x178xf32> to vector<8xf32>
    %95 = vector.shape_cast %94 : vector<8xf32> to vector<8x1xf32>
    %cst_71 = arith.constant 7.812500e-03 : f32
    %96 = vector.broadcast %cst_71 : f32 to vector<8x1xf32>
    %97 = arith.mulf %95, %96 : vector<8x1xf32>
    %98 = arith.mulf %93, %91 : vector<8x178xf32>
    %cst_72 = arith.constant dense<0.000000e+00> : vector<8xf32>
    %99 = vector.multi_reduction <add>, %98, %cst_72 [1] : vector<8x178xf32> to vector<8xf32>
    %100 = vector.shape_cast %99 : vector<8xf32> to vector<8x1xf32>
    %cst_73 = arith.constant 7.812500e-03 : f32
    %101 = vector.broadcast %cst_73 : f32 to vector<8x1xf32>
    %102 = arith.mulf %100, %101 : vector<8x1xf32>
    %103 = arith.mulf %97, %97 : vector<8x1xf32>
    %104 = arith.subf %102, %103 : vector<8x1xf32>
    %cst_74 = arith.constant 9.99999974E-6 : f32
    %105 = vector.broadcast %cst_74 : f32 to vector<8x1xf32>
    %106 = arith.addf %104, %105 : vector<8x1xf32>
    %107 = math.rsqrt %106 : vector<8x1xf32>
    %108 = arith.mulf %2, %107 : vector<8x1xf32>
    %109 = arith.mulf %97, %108 : vector<8x1xf32>
    %110 = arith.subf %3, %109 : vector<8x1xf32>
    %111 = vector.broadcast %108 : vector<8x1xf32> to vector<8x178xf32>
    %112 = arith.mulf %91, %111 : vector<8x178xf32>
    %113 = vector.broadcast %110 : vector<8x1xf32> to vector<8x178xf32>
    %114 = arith.addf %112, %113 : vector<8x178xf32>
    %115 = vector.broadcast %63 : vector<1x178xf32> to vector<8x178xf32>
    %116 = arith.mulf %114, %115 : vector<8x178xf32>
    %cst_75 = arith.constant 0.000000e+00 : f32
    %117 = vector.broadcast %cst_75 : f32 to vector<8x200xf32>
    %c0_76 = arith.constant 0 : index
    %c0_77 = arith.constant 0 : index
    %118 = vector.load %arg11[%c0_76, %c0_77] : memref<8x200xf32, #tpu.memory_space<vmem>>, vector<8x200xf32>
    tpu.vector_store %arg11[%c0_76, %c0_77], %117 {strides = array<i32>} : memref<8x200xf32, #tpu.memory_space<vmem>>, vector<8x200xf32>,
    %c0_78 = arith.constant 0 : index
    %c11 = arith.constant 11 : index
    %119 = vector.load %arg11[%c0_78, %c11] : memref<8x200xf32, #tpu.memory_space<vmem>>, vector<8x178xf32>
    tpu.vector_store %arg11[%c0_78, %c11], %116 {strides = array<i32>} : memref<8x200xf32, #tpu.memory_space<vmem>>, vector<8x178xf32>,
    %c0_79 = arith.constant 0 : index
    %c0_80 = arith.constant 0 : index
    %120 = vector.load %arg11[%c0_79, %c0_80] : memref<8x200xf32, #tpu.memory_space<vmem>>, vector<8x200xf32>
    %121 = vector.extract_strided_slice %120 {offsets = [0, 0], sizes = [8, 178], strides = [1, 1]} : vector<8x200xf32> to vector<8x178xf32>
    %c0_81 = arith.constant 0 : index
    %c0_82 = arith.constant 0 : index
    %122 = vector.load %arg13[%c0_81, %c0_82] : memref<72x178xf32, #tpu.memory_space<vmem>>, vector<8x178xf32>
    tpu.vector_store %arg13[%c0_81, %c0_82], %121 {strides = array<i32>} : memref<72x178xf32, #tpu.memory_space<vmem>>, vector<8x178xf32>,
    %123 = vector.extract_strided_slice %120 {offsets = [0, 1], sizes = [8, 178], strides = [1, 1]} : vector<8x200xf32> to vector<8x178xf32>
    %c8_83 = arith.constant 8 : index
    %c0_84 = arith.constant 0 : index
    %124 = vector.load %arg13[%c8_83, %c0_84] : memref<72x178xf32, #tpu.memory_space<vmem>>, vector<8x178xf32>
    tpu.vector_store %arg13[%c8_83, %c0_84], %123 {strides = array<i32>} : memref<72x178xf32, #tpu.memory_space<vmem>>, vector<8x178xf32>,
    %125 = vector.extract_strided_slice %120 {offsets = [0, 2], sizes = [8, 178], strides = [1, 1]} : vector<8x200xf32> to vector<8x178xf32>
    %c16_85 = arith.constant 16 : index
    %c0_86 = arith.constant 0 : index
    %126 = vector.load %arg13[%c16_85, %c0_86] : memref<72x178xf32, #tpu.memory_space<vmem>>, vector<8x178xf32>
    tpu.vector_store %arg13[%c16_85, %c0_86], %125 {strides = array<i32>} : memref<72x178xf32, #tpu.memory_space<vmem>>, vector<8x178xf32>,
    %127 = vector.extract_strided_slice %120 {offsets = [0, 10], sizes = [8, 178], strides = [1, 1]} : vector<8x200xf32> to vector<8x178xf32>
    %c24_87 = arith.constant 24 : index
    %c0_88 = arith.constant 0 : index
    %128 = vector.load %arg13[%c24_87, %c0_88] : memref<72x178xf32, #tpu.memory_space<vmem>>, vector<8x178xf32>
    tpu.vector_store %arg13[%c24_87, %c0_88], %127 {strides = array<i32>} : memref<72x178xf32, #tpu.memory_space<vmem>>, vector<8x178xf32>,
    %129 = vector.extract_strided_slice %120 {offsets = [0, 11], sizes = [8, 178], strides = [1, 1]} : vector<8x200xf32> to vector<8x178xf32>
    %c32_89 = arith.constant 32 : index
    %c0_90 = arith.constant 0 : index
    %130 = vector.load %arg13[%c32_89, %c0_90] : memref<72x178xf32, #tpu.memory_space<vmem>>, vector<8x178xf32>
    tpu.vector_store %arg13[%c32_89, %c0_90], %129 {strides = array<i32>} : memref<72x178xf32, #tpu.memory_space<vmem>>, vector<8x178xf32>,
    %131 = vector.extract_strided_slice %120 {offsets = [0, 12], sizes = [8, 178], strides = [1, 1]} : vector<8x200xf32> to vector<8x178xf32>
    %c40_91 = arith.constant 40 : index
    %c0_92 = arith.constant 0 : index
    %132 = vector.load %arg13[%c40_91, %c0_92] : memref<72x178xf32, #tpu.memory_space<vmem>>, vector<8x178xf32>
    tpu.vector_store %arg13[%c40_91, %c0_92], %131 {strides = array<i32>} : memref<72x178xf32, #tpu.memory_space<vmem>>, vector<8x178xf32>,
    %133 = vector.extract_strided_slice %120 {offsets = [0, 20], sizes = [8, 178], strides = [1, 1]} : vector<8x200xf32> to vector<8x178xf32>
    %c48_93 = arith.constant 48 : index
    %c0_94 = arith.constant 0 : index
    %134 = vector.load %arg13[%c48_93, %c0_94] : memref<72x178xf32, #tpu.memory_space<vmem>>, vector<8x178xf32>
    tpu.vector_store %arg13[%c48_93, %c0_94], %133 {strides = array<i32>} : memref<72x178xf32, #tpu.memory_space<vmem>>, vector<8x178xf32>,
    %135 = vector.extract_strided_slice %120 {offsets = [0, 21], sizes = [8, 178], strides = [1, 1]} : vector<8x200xf32> to vector<8x178xf32>
    %c56_95 = arith.constant 56 : index
    %c0_96 = arith.constant 0 : index
    %136 = vector.load %arg13[%c56_95, %c0_96] : memref<72x178xf32, #tpu.memory_space<vmem>>, vector<8x178xf32>
    tpu.vector_store %arg13[%c56_95, %c0_96], %135 {strides = array<i32>} : memref<72x178xf32, #tpu.memory_space<vmem>>, vector<8x178xf32>,
    %137 = vector.extract_strided_slice %120 {offsets = [0, 22], sizes = [8, 178], strides = [1, 1]} : vector<8x200xf32> to vector<8x178xf32>
    %c64_97 = arith.constant 64 : index
    %c0_98 = arith.constant 0 : index
    %138 = vector.load %arg13[%c64_97, %c0_98] : memref<72x178xf32, #tpu.memory_space<vmem>>, vector<8x178xf32>
    tpu.vector_store %arg13[%c64_97, %c0_98], %137 {strides = array<i32>} : memref<72x178xf32, #tpu.memory_space<vmem>>, vector<8x178xf32>,
    %c0_99 = arith.constant 0 : index
    %c0_100 = arith.constant 0 : index
    %139 = vector.load %arg3[%c0_99, %c0_100] : memref<8x72xf32, #tpu.memory_space<vmem>>, vector<8x72xf32>
    %c0_101 = arith.constant 0 : index
    %c0_102 = arith.constant 0 : index
    %140 = vector.load %arg13[%c0_101, %c0_102] : memref<72x178xf32, #tpu.memory_space<vmem>>, vector<72x178xf32>
    %cst_103 = arith.constant dense<0.000000e+00> : vector<8x178xf32>
    %141 = tpu.matmul %139, %140, %cst_103 {dimension_numbers = #tpu.dot_dimension_numbers<[1], [0], [0], [1], [0, 0, 1, 1], [], []>} : vector<8x72xf32>, vector<72x178xf32>, vector<8x178xf32> -> vector<8x178xf32>
    %142 = vector.broadcast %4 : vector<8x1xf32> to vector<8x178xf32>
    %143 = arith.addf %141, %142 : vector<8x178xf32>
    %144 = vector.extract_strided_slice %41 {offsets = [0, 11], sizes = [8, 178], strides = [1, 1]} : vector<8x200xf32> to vector<8x178xf32>
    %145 = arith.addf %143, %144 : vector<8x178xf32>
    %c0_104 = arith.constant 0 : index
    %c0_105 = arith.constant 0 : index
    %146 = vector.load %arg7[%c0_104, %c0_105] : memref<178x128xf32, #tpu.memory_space<vmem>>, vector<178x128xf32>
    %cst_106 = arith.constant dense<0.000000e+00> : vector<8x128xf32>
    %147 = tpu.matmul %145, %146, %cst_106 {dimension_numbers = #tpu.dot_dimension_numbers<[1], [0], [0], [1], [0, 0, 1, 1], [], []>} : vector<8x178xf32>, vector<178x128xf32>, vector<8x128xf32> -> vector<8x128xf32>
    %c0_107 = arith.constant 0 : index
    %c0_108 = arith.constant 0 : index
    %148 = vector.load %arg8[%c0_107, %c0_108] : memref<8x128xf32, #tpu.memory_space<vmem>>, vector<8x128xf32>
    tpu.vector_store %arg8[%c0_107, %c0_108], %147 {strides = array<i32>} : memref<8x128xf32, #tpu.memory_space<vmem>>, vector<8x128xf32>,
    return
  }
}

</mosaic_0001>

<bundles_post_ra>
// kernel: residual_conv2d_forward.1
= control target key start
LH: loop header
LB: loop body
LE: loop exit
PB: predicated region body
PF: predicated region fallthrough
CT: control target
= control target key end

     0   :  { %13 = vsyncpa [#allocation8], 0  ;;  %s3065_s0 = inlined_call_operand.vmem [shape: f32[8,256], index: 0, kind: input, shape index: {}]   ;;  %s3066_s1 = inlined_call_operand.vmem [shape: f32[8,36], index: 1, kind: input, shape index: {}]   ;;  %s3067_s2 = inlined_call_operand.vmem [shape: f32[8,72], index: 2, kind: input, shape index: {}]   ;;  %s3068_s3 = inlined_call_operand.vmem [shape: f32[8,72], index: 3, kind: input, shape index: {}]   ;;  %s3069_s4 = inlined_call_operand.vmem [shape: f32[8,5], index: 4, kind: input, shape index: {}]   ;;  %s3070_s5 = inlined_call_operand.hbm [shape: f32[256,324], index: 5, kind: input, shape index: {}]   ;;  %s3071_s6 = inlined_call_operand.hbm [shape: f32[610,200], index: 6, kind: input, shape index: {}]   ;;  %s3072_s7 = inlined_call_operand.vmem [shape: f32[178,128], index: 7, kind: input, shape index: {}]   ;;  %s3073_s8 = inlined_call_operand.vmem [shape: f32[8,128], index: 8, kind: output, shape index: {}]  }
   0x1   :  { %14 = vsyncpa [#allocation10], 0  ;;  %s2546_s27 = smov [#allocation7]   ;;  %s2498_s9 = scalar_lea.hbm %s3070_s5, 12288 }
   0x2   :  { %s30_s28 = sshll.u32 %s2546_s27, 4  ;;  %p2499_p0 = scmp.ne.s32.totalorder %s3070_s5, %s2498_s9  ;;  %s31_s28 = int_to_ptr.vmem [resolvable:$true] %s30_s28 }
   0x3   :  { %p2502_p1 = scmp.lt.u32.totalorder %s2498_s9, %s3070_s5 }
   0x5   :  { %p2504_p2 = pnand %p2502_p1, %p2499_p0 }
   0x7   :  { %2507 = shalt.err (!%p2504_p2)
}
   0x8   :  { %s2508_s14 = scalar_lea.vmem %s31_s28, 12288  ;;  %p2513_p4 = scmp.lt.s32.totalorder %s31_s28, %s31_s28 }
   0x9   :  { %p2509_p3 = scmp.ne.s32.totalorder %s31_s28, %s2508_s14  ;;  %p2514_p5 = scmp.lt.s32.totalorder %s2508_s14, %s2508_s14 }
   0xb   :  { %p2515_p6 = por %p2514_p5, %p2513_p4 }
   0xd   :  { %p2516_p7 = pnand %p2515_p6, %p2509_p3 }
   0xf   :  { %2519 = shalt.err (!%p2516_p7)
}
  0x10   :  { %s2547_s15 = smov 384   ;;  %s2548_s16 = smov 24  }
  0x11   :  { %36 = dma.hbm_to_vmem [thread:$0]  %s3070_s5, 12288, %s31_s28, [#allocation8], %s2547_s15, %s2547_s15, %s2548_s16  }
  0x12   :  { %s2549_s19 = smov [#allocation9]   ;;  %s2520_s23 = scalar_lea.hbm %s3071_s6, 19712 }
  0x13   :  { %s42_s20 = sshll.u32 %s2549_s19, 4  ;;  %p2521_p8 = scmp.ne.s32.totalorder %s3071_s6, %s2520_s23  ;;  %s43_s20 = int_to_ptr.vmem [resolvable:$true] %s42_s20 }
  0x14   :  { %p2524_p9 = scmp.lt.u32.totalorder %s2520_s23, %s3071_s6 }
  0x16   :  { %p2526_p10 = pnand %p2524_p9, %p2521_p8 }
  0x18   :  { %2529 = shalt.err (!%p2526_p10)
}
  0x19   :  { %s2530_s29 = scalar_lea.vmem %s43_s20, 19712  ;;  %p2535_p12 = scmp.lt.s32.totalorder %s43_s20, %s43_s20 }
  0x1a   :  { %p2531_p11 = scmp.ne.s32.totalorder %s43_s20, %s2530_s29  ;;  %p2536_p13 = scmp.lt.s32.totalorder %s2530_s29, %s2530_s29 }
  0x1c   :  { %p2537_p0 = por %p2536_p13, %p2535_p12 }
  0x1e   :  { %p2538_p1 = pnand %p2537_p0, %p2531_p11 }
  0x20   :  { %2541 = shalt.err (!%p2538_p1)
}
  0x21   :  { %s2550_s5 = smov 256   ;;  %s2551_s28 = smov 16  }
  0x22   :  { %48 = dma.hbm_to_vmem [thread:$0]  %s3071_s6, 19712, %s43_s20, [#allocation10], %s2550_s5, %s2550_s5, %s2551_s28  }
  0x23   :  { %2542 = dma.done.wait [#allocation8], 12288  }
  0x24   :  { %2543 = vsyncadd [#allocation8], 4294955008 }
  0x25   :  { %2544 = dma.done.wait [#allocation10], 19712  }
  0x26   :  { %2545 = vsyncadd [#allocation10], 4294947584  ;;  %v59_v0 = vld [vmem:[#allocation7 + $0x8] sm:$0xff]  ;;  %v62_v1 = vld [vmem:[#allocation7 + $0x20] sm:$0xff]  ;;  %s2553_s17 = smov 127   ;;  %s2554_s18 = smov 110  }
  0x27   :  { %v58_v2 = vld [vmem:[#allocation7] sm:$0xff]  ;;  %v2017_v3 = vpack.c.bf16 %v62_v1, %v59_v0  ;;  %v61_v4 = vld [vmem:[#allocation7 + $0x18] sm:$0xff]  ;;  %v68_v6 = vld [vmem:[#allocation7 + $0x50] sm:$0xff]  ;;  %s2555_s19 = smov 126   ;;  %s2556_s20 = smov 108   ;;  %vm302_vm0 = vcmask 551936  }
  0x28   :  { %v65_v5 = vld [vmem:[#allocation7 + $0x38] sm:$0xff]  ;;  %v2019_v7 = vpack.c.bf16 %v61_v4, %v58_v2  ;;  %v64_v9 = vld [vmem:[#allocation7 + $0x30] sm:$0xff]  ;;  %v67_v10 = vld [vmem:[#allocation7 + $0x48] sm:$0xff]  ;;  %s2557_s21 = smov 91   ;;  %s2558_s22 = smov 109   ;;  %vm470_vm1 = vcmask 1044000  }
  0x29   :  { %v2021_v8 = vpack.c.bf16 %v68_v6, %v65_v5  ;;  %v71_v11 = vld [vmem:[#allocation7 + $0x68] sm:$0xff]  ;;  %2018 = vmatprep.subr.bf16.mxu0 %v2017_v3  ;;  %2114 = vmatprep.subr.bf16.mxu1 %v2017_v3  ;;  %v74_v12 = vld [vmem:[#allocation7 + $0x80] sm:$0xff]  ;;  %v2023_v13 = vpack.c.bf16 %v67_v10, %v64_v9  ;;  %v73_v16 = vld [vmem:[#allocation7 + $0x78] sm:$0xff]  ;;  %s2559_s23 = smov 92   ;;  %vm471_vm2 = vcmask 1047556   ;;  %vm463_vm3 = vcmask 556032  }
  0x2a   :  { %2020 = vmatpush1.bf16.msra.mxu0 %v2019_v7  ;;  %2116 = vmatpush1.bf16.msra.mxu1 %v2019_v7  ;;  %v2025_v14 = vpack.c.bf16 %v74_v12, %v71_v11  ;;  %v70_v15 = vld [vmem:[#allocation7 + $0x60] sm:$0xff]  ;;  %v77_v17 = vld [vmem:[#allocation7 + $0x98] sm:$0xff]  ;;  %v80_v18 = vld [vmem:[#allocation7 + $0xb0] sm:$0xff]  ;;  %vm532_vm5 = vcmask 1031168   ;;  %vm506_vm6 = vcmask 1039360   ;;  %vm557_vm7 = vcmask 900096  }
  0x2b   :  { %2022 = vmatprep.subr.bf16.mxu0 %v2021_v8  ;;  %2118 = vmatprep.subr.bf16.mxu1 %v2021_v8  ;;  %v2027_v19 = vpack.c.bf16 %v73_v16, %v70_v15  ;;  %v2029_v20 = vpack.c.bf16 %v80_v18, %v77_v17  ;;  %v76_v21 = vld [vmem:[#allocation7 + $0x90] sm:$0xff]  ;;  %v79_v22 = vld [vmem:[#allocation7 + $0xa8] sm:$0xff]  ;;  %v86_v24 = vld [vmem:[#allocation7 + $0xe0] sm:$0xff]  ;;  %vm607_vm8 = vcmask 883712   ;;  %vm582_vm9 = vcmask 891904   ;;  %s2560_s24 = smov 90  }
  0x2c   :  { %v83_v23 = vld [vmem:[#allocation7 + $0xc8] sm:$0xff]  ;;  %v2031_v25 = vpack.c.bf16 %v79_v22, %v76_v21  ;;  %v82_v27 = vld [vmem:[#allocation7 + $0xc0] sm:$0xff]  ;;  %v85_v28 = vld [vmem:[#allocation7 + $0xd8] sm:$0xff]  ;;  %vm465_vm10 = vcmask 1043456   ;;  %vm474_vm11 = vcmask 64516   ;;  %vm491_vm13 = vcmask 797696  }
  0x2d   :  { %v2033_v26 = vpack.c.bf16 %v86_v24, %v83_v23  ;;  %v89_v29 = vld [vmem:[#allocation7 + $0xf8] sm:$0xff]  ;;  %v92_v30 = vld [vmem:[#allocation7 + $0x110] sm:$0xff]  ;;  %v2035_v31 = vpack.c.bf16 %v85_v28, %v82_v27  ;;  %v91_v34 = vld [vmem:[#allocation7 + $0x108] sm:$0xff]  ;;  %vm635_vm14 = vcmask 752640   ;;  %vm663_vm15 = vcmask 744448   ;;  %s2566_s5 = smov 117  }
  0x2e   :  { %2024 = vmatpush1.bf16.msra.mxu0 %v2023_v13  ;;  %2120 = vmatpush1.bf16.msra.mxu1 %v2023_v13  ;;  %v2037_v32 = vpack.c.bf16 %v92_v30, %v89_v29  ;;  %v88_v33 = vld [vmem:[#allocation7 + $0xf0] sm:$0xff]  ;;  %v95_v35 = vld [vmem:[#allocation7 + $0x128] sm:$0xff]  ;;  %v98_v36 = vld [vmem:[#allocation7 + $0x140] sm:$0xff]  ;;  %s2567_s28 = smov 116   ;;  %s2568_s30 = smov 107  }
  0x2f   :  { %2026 = vmatprep.subr.bf16.mxu0 %v2025_v14  ;;  %2122 = vmatprep.subr.bf16.mxu1 %v2025_v14  ;;  %v2039_v37 = vpack.c.bf16 %v91_v34, %v88_v33  ;;  %v94_v38 = vld [vmem:[#allocation7 + $0x120] sm:$0xff]  ;;  %v2041_v39 = vpack.c.bf16 %v98_v36, %v95_v35  ;;  %v97_v40 = vld [vmem:[#allocation7 + $0x138] sm:$0xff]  ;;  %v104_v44 = vld [vmem:[#allocation7 + $0x170] sm:$0xff]  ;;  %s2569_s9 = smov 106   ;;  %s2574_s12 = smov 11  }
  0x30   :  { %v2648_v41 = vld [vmem:[%s3065_s0 + $0x8] sm:$0xf]  ;;  %v2653_v42 = vld [vmem:[%s3065_s0 + $0x8] sm:$0xf0]  ;;  %v2043_v46 = vpack.c.bf16 %v97_v40, %v94_v38  ;;  %v100_v48 = vld [vmem:[#allocation7 + $0x150] sm:$0xff] }
  0x31   :  { %v101_v43 = vld [vmem:[#allocation7 + $0x158] sm:$0xff]  ;;  %220 = vmatprep.mubr.f32.mxu0 %v2648_v41  ;;  %v309_v45 = vrot.slane %v2653_v42, 4  ;;  %v103_v49 = vld [vmem:[#allocation7 + $0x168] sm:$0xff]  ;;  %v110_v51 = vld [vmem:[#allocation7 + $0x1a0] sm:$0xff] }
  0x32   :  { %2028 = vmatpush1.bf16.msra.mxu0 %v2027_v19  ;;  %2124 = vmatpush1.bf16.msra.mxu1 %v2027_v19  ;;  %v2045_v47 = vpack.c.bf16 %v104_v44, %v101_v43  ;;  %v107_v50 = vld [vmem:[#allocation7 + $0x188] sm:$0xff]  ;;  %v2047_v52 = vpack.c.bf16 %v103_v49, %v100_v48  ;;  %v106_v54 = vld [vmem:[#allocation7 + $0x180] sm:$0xff]  ;;  %v109_v55 = vld [vmem:[#allocation7 + $0x198] sm:$0xff] }
  0x33   :  { %2030 = vmatprep.subr.bf16.mxu0 %v2029_v20  ;;  %2126 = vmatprep.subr.bf16.mxu1 %v2029_v20  ;;  %v2049_v53 = vpack.c.bf16 %v110_v51, %v107_v50  ;;  %v113_v56 = vld [vmem:[#allocation7 + $0x1b8] sm:$0xff]  ;;  %v116_v57 = vld [vmem:[#allocation7 + $0x1d0] sm:$0xff]  ;;  %v2051_v58 = vpack.c.bf16 %v109_v55, %v106_v54  ;;  %v115_v61 = vld [vmem:[#allocation7 + $0x1c8] sm:$0xff] }
  0x34   :  { %376 = vmatprep.mubr.f32.mxu1 %v309_v45  ;;  %v2053_v59 = vpack.c.bf16 %v116_v57, %v113_v56  ;;  %v112_v60 = vld [vmem:[#allocation7 + $0x1b0] sm:$0xff]  ;;  %v119_v62 = vld [vmem:[#allocation7 + $0x1e8] sm:$0xff]  ;;  %v122_v63 = vld [vmem:[#allocation7 + $0x200] sm:$0xff] }
  0x35   :  { %v2055_v0 = vpack.c.bf16 %v115_v61, %v112_v60  ;;  %v2057_v1 = vpack.c.bf16 %v122_v63, %v119_v62  ;;  %v118_v2 = vld [vmem:[#allocation7 + $0x1e0] sm:$0xff]  ;;  %v121_v3 = vld [vmem:[#allocation7 + $0x1f8] sm:$0xff]  ;;  %v128_v5 = vld [vmem:[#allocation7 + $0x230] sm:$0xff] }
  0x36   :  { %2032 = vmatpush1.bf16.msra.mxu0 %v2031_v25  ;;  %2128 = vmatpush1.bf16.msra.mxu1 %v2031_v25  ;;  %v125_v4 = vld [vmem:[#allocation7 + $0x218] sm:$0xff]  ;;  %v2059_v6 = vpack.c.bf16 %v121_v3, %v118_v2  ;;  %v124_v8 = vld [vmem:[#allocation7 + $0x210] sm:$0xff]  ;;  %v127_v9 = vld [vmem:[#allocation7 + $0x228] sm:$0xff] }
  0x37   :  { %2034 = vmatprep.subr.bf16.mxu0 %v2033_v26  ;;  %2130 = vmatprep.subr.bf16.mxu1 %v2033_v26  ;;  %v2061_v7 = vpack.c.bf16 %v128_v5, %v125_v4  ;;  %v131_v10 = vld [vmem:[#allocation7 + $0x248] sm:$0xff]  ;;  %v134_v11 = vld [vmem:[#allocation7 + $0x260] sm:$0xff]  ;;  %v2063_v12 = vpack.c.bf16 %v127_v9, %v124_v8  ;;  %v133_v15 = vld [vmem:[#allocation7 + $0x258] sm:$0xff] }
  0x38   :  { %v2065_v13 = vpack.c.bf16 %v134_v11, %v131_v10  ;;  %v130_v14 = vld [vmem:[#allocation7 + $0x240] sm:$0xff]  ;;  %v137_v16 = vld [vmem:[#allocation7 + $0x278] sm:$0xff]  ;;  %v140_v17 = vld [vmem:[#allocation7 + $0x290] sm:$0xff] }
  0x39   :  { %v2067_v18 = vpack.c.bf16 %v133_v15, %v130_v14  ;;  %v2069_v19 = vpack.c.bf16 %v140_v17, %v137_v16  ;;  %v136_v20 = vld [vmem:[#allocation7 + $0x270] sm:$0xff]  ;;  %v139_v21 = vld [vmem:[#allocation7 + $0x288] sm:$0xff]  ;;  %v146_v23 = vld [vmem:[#allocation7 + $0x2c0] sm:$0xff] }
  0x3a   :  { %2036 = vmatpush1.bf16.msra.mxu0 %v2035_v31  ;;  %2132 = vmatpush1.bf16.msra.mxu1 %v2035_v31  ;;  %v143_v22 = vld [vmem:[#allocation7 + $0x2a8] sm:$0xff]  ;;  %v2071_v24 = vpack.c.bf16 %v139_v21, %v136_v20  ;;  %v142_v26 = vld [vmem:[#allocation7 + $0x2a0] sm:$0xff]  ;;  %v145_v27 = vld [vmem:[#allocation7 + $0x2b8] sm:$0xff] }
  0x3b   :  { %2038 = vmatprep.subr.bf16.mxu0 %v2037_v32  ;;  %2134 = vmatprep.subr.bf16.mxu1 %v2037_v32  ;;  %v2073_v25 = vpack.c.bf16 %v146_v23, %v143_v22  ;;  %v149_v28 = vld [vmem:[#allocation7 + $0x2d8] sm:$0xff]  ;;  %v152_v29 = vld [vmem:[#allocation7 + $0x2f0] sm:$0xff]  ;;  %v2075_v30 = vpack.c.bf16 %v145_v27, %v142_v26  ;;  %v151_v33 = vld [vmem:[#allocation7 + $0x2e8] sm:$0xff] }
  0x3c   :  { %v2077_v31 = vpack.c.bf16 %v152_v29, %v149_v28  ;;  %v148_v32 = vld [vmem:[#allocation7 + $0x2d0] sm:$0xff]  ;;  %v111_v35 = vld [vmem:[#allocation7 + $0x1a8] sm:$0xff]  ;;  %v114_v43 = vld [vmem:[#allocation7 + $0x1c0] sm:$0xff] }
  0x3d   :  { %v108_v34 = vld [vmem:[#allocation7 + $0x190] sm:$0xff]  ;;  %v2079_v36 = vpack.c.bf16 %v151_v33, %v148_v32  ;;  %v63_v40 = vld [vmem:[#allocation7 + $0x28] sm:$0xff]  ;;  %v117_v44 = vld [vmem:[#allocation7 + $0x1d8] sm:$0xff] }
  0x3e   :  { %2040 = vmatpush1.bf16.msra.mxu0 %v2039_v37  ;;  %2136 = vmatpush1.bf16.msra.mxu1 %v2039_v37  ;;  %v2662_v37 = vld [vmem:[%s3065_s0] sm:$0xf0]  ;;  %v2664_v38 = vpack.c.bf16 %v111_v35, %v108_v34  ;;  %v2085_v49 = vpack.c.bf16 %v117_v44, %v114_v43  ;;  %v66_v50 = vld [vmem:[#allocation7 + $0x40] sm:$0xff]  ;;  %v69_v51 = vld [vmem:[#allocation7 + $0x58] sm:$0xff] }
  0x3f   :  { %2042 = vmatprep.subr.bf16.mxu0 %v2041_v39  ;;  %2138 = vmatprep.subr.bf16.mxu1 %v2041_v39  ;;  %v60_v39 = vld [vmem:[#allocation7 + $0x10] sm:$0xff]  ;;  %v2087_v54 = vpack.c.bf16 %v69_v51, %v66_v50  ;;  %v75_v57 = vld [vmem:[#allocation7 + $0x88] sm:$0xff]  ;;  %v78_v62 = vld [vmem:[#allocation7 + $0xa0] sm:$0xff] }
  0x40   :  { %v2083_v48 = vpack.c.bf16 %v63_v40, %v60_v39  ;;  %v72_v56 = vld [vmem:[#allocation7 + $0x70] sm:$0xff]  ;;  %v81_v63 = vld [vmem:[#allocation7 + $0xb8] sm:$0xff]  ;;  %v138_v5 = vld [vmem:[#allocation7 + $0x280] sm:$0xff] }
  0x41   :  { %v2091_v60 = vpack.c.bf16 %v75_v57, %v72_v56  ;;  %v2095_v2 = vpack.c.bf16 %v81_v63, %v78_v62  ;;  %v84_v4 = vld [vmem:[#allocation7 + $0xd0] sm:$0xff]  ;;  %v90_v9 = vld [vmem:[#allocation7 + $0x100] sm:$0xff]  ;;  %v93_v10 = vld [vmem:[#allocation7 + $0x118] sm:$0xff] }
  0x42   :  { %2044 = vmatpush1.bf16.msra.mxu0 %v2043_v46  ;;  %2140 = vmatpush1.bf16.msra.mxu1 %v2043_v46  ;;  %v308_v46 = vrot.slane %v2662_v37, 4  ;;  %v144_v11 = vld [vmem:[#allocation7 + $0x2b0] sm:$0xff]  ;;  %v99_v16 = vld [vmem:[#allocation7 + $0x148] sm:$0xff]  ;;  %v150_v17 = vld [vmem:[#allocation7 + $0x2e0] sm:$0xff] }
  0x43   :  { %2046 = vmatprep.subr.bf16.mxu0 %v2045_v47  ;;  %2142 = vmatprep.subr.bf16.mxu1 %v2045_v47  ;;  %v154_v47 = vld [vmem:[%s3065_s0] sm:$0xf]  ;;  %v102_v21 = vld [vmem:[#allocation7 + $0x160] sm:$0xff]  ;;  %v105_v22 = vld [vmem:[#allocation7 + $0x178] sm:$0xff]  ;;  %s2552_s0 = smov 68  }
  0x44   :  { %v96_v15 = vld [vmem:[#allocation7 + $0x130] sm:$0xff]  ;;  %v2111_v23 = vpack.c.bf16 %v105_v22, %v102_v21  ;;  %vm472_vm4 = vmor %vm471_vm2, %vm470_vm1  ;;  %vm738_vm1 = vcmask 293888   ;;  %vm2564_vm2 = vmmov 0  }
  0x45   :  { %vm475_vm12 = vmor %vm474_vm11, %vm465_vm10  ;;  %vm1415_vm11 = vcmask 965632  }
  0x46   :  { %2048 = vmatpush1.bf16.msra.mxu0 %v2047_v52  ;;  %2144 = vmatpush1.bf16.msra.mxu1 %v2047_v52  ;;  %v120_v52 = vld [vmem:[#allocation7 + $0x1f0] sm:$0xff] }
  0x47   :  { %2050 = vmatprep.subr.bf16.mxu0 %v2049_v53  ;;  %2146 = vmatprep.subr.bf16.mxu1 %v2049_v53  ;;  %v123_v53 = vld [vmem:[#allocation7 + $0x208] sm:$0xff] }
  0x48   :  { %v2089_v55 = vpack.c.bf16 %v123_v53, %v120_v52 }
  0x4a   :  { %2052 = vmatpush1.bf16.msra.mxu0 %v2051_v58  ;;  %2148 = vmatpush1.bf16.msra.mxu1 %v2051_v58  ;;  %v126_v58 = vld [vmem:[#allocation7 + $0x220] sm:$0xff] }
  0x4b   :  { %2054 = vmatprep.subr.bf16.mxu0 %v2053_v59  ;;  %2150 = vmatprep.subr.bf16.mxu1 %v2053_v59  ;;  %v129_v59 = vld [vmem:[#allocation7 + $0x238] sm:$0xff] }
  0x4c   :  { %v2093_v61 = vpack.c.bf16 %v129_v59, %v126_v58 }
  0x4e   :  { %2056 = vmatpush1.bf16.msra.mxu0 %v2055_v0  ;;  %2152 = vmatpush1.bf16.msra.mxu1 %v2055_v0  ;;  %v132_v0 = vld [vmem:[#allocation7 + $0x250] sm:$0xff] }
  0x4f   :  { %2058 = vmatprep.subr.bf16.mxu0 %v2057_v1  ;;  %2154 = vmatprep.subr.bf16.mxu1 %v2057_v1  ;;  %v135_v1 = vld [vmem:[#allocation7 + $0x268] sm:$0xff] }
  0x50   :  { %v2097_v3 = vpack.c.bf16 %v135_v1, %v132_v0 }
  0x52   :  { %2060 = vmatpush1.bf16.msra.mxu0 %v2059_v6  ;;  %2156 = vmatpush1.bf16.msra.mxu1 %v2059_v6  ;;  %v141_v6 = vld [vmem:[#allocation7 + $0x298] sm:$0xff] }
  0x53   :  { %2062 = vmatprep.subr.bf16.mxu0 %v2061_v7  ;;  %2158 = vmatprep.subr.bf16.mxu1 %v2061_v7  ;;  %v2101_v8 = vpack.c.bf16 %v141_v6, %v138_v5  ;;  %v2562_v5 = vmov 0  }
  0x54   :  { %2482 = vset.pattern.permute.xlu1 %v2562_v5 }
  0x56   :  { %2064 = vmatpush1.bf16.msra.mxu0 %v2063_v12  ;;  %2160 = vmatpush1.bf16.msra.mxu1 %v2063_v12  ;;  %v147_v12 = vld [vmem:[#allocation7 + $0x2c8] sm:$0xff] }
  0x57   :  { %2066 = vmatprep.subr.bf16.mxu0 %v2065_v13  ;;  %2162 = vmatprep.subr.bf16.mxu1 %v2065_v13  ;;  %v2103_v13 = vpack.c.bf16 %v93_v10, %v90_v9  ;;  %v2105_v14 = vpack.c.bf16 %v147_v12, %v144_v11 }
  0x5a   :  { %2068 = vmatpush1.bf16.msra.mxu0 %v2067_v18  ;;  %2164 = vmatpush1.bf16.msra.mxu1 %v2067_v18  ;;  %v153_v18 = vld [vmem:[#allocation7 + $0x2f8] sm:$0xff] }
  0x5b   :  { %2070 = vmatprep.subr.bf16.mxu0 %v2069_v19  ;;  %2166 = vmatprep.subr.bf16.mxu1 %v2069_v19  ;;  %v2107_v19 = vpack.c.bf16 %v99_v16, %v96_v15  ;;  %v2109_v20 = vpack.c.bf16 %v153_v18, %v150_v17 }
  0x5e   :  { %2072 = vmatpush1.bf16.msra.mxu0 %v2071_v24  ;;  %2168 = vmatpush1.bf16.msra.mxu1 %v2071_v24 }
  0x5f   :  { %2074 = vmatprep.subr.bf16.mxu0 %v2073_v25  ;;  %2170 = vmatprep.subr.bf16.mxu1 %v2073_v25 }
  0x62   :  { %2076 = vmatpush1.bf16.msra.mxu0 %v2075_v30  ;;  %2172 = vmatpush1.bf16.msra.mxu1 %v2075_v30 }
  0x63   :  { %2078 = vmatprep.subr.bf16.mxu0 %v2077_v31  ;;  %2174 = vmatprep.subr.bf16.mxu1 %v2077_v31 }
  0x66   :  { %2080 = vmatpush1.bf16.msra.mxu0 %v2079_v36  ;;  %2176 = vmatpush1.bf16.msra.mxu1 %v2079_v36 }
  0x67   :  { %2082 = vmatprep.subr.bf16.mxu0 %v2664_v38 }
  0x69   :  { %221 = vmatmul.mubr.f32.vlgmr.msra.gmra.mrb[0].mxu0 %v154_v47  ;;  %377 = vmatmul.mubr.f32.vlgmr.msra.gmra.mrb[0].mxu1 %v308_v46 }
  0x6a   :  { %2084 = vmatpush3.bf16.msra.mxu0 %v2083_v48  ;;  %291 = vmatprep.mubr.f32.mxu0 %v2648_v41  ;;  %v87_v41 = vld [vmem:[#allocation7 + $0xe8] sm:$0xff] }
  0x6b   :  { %2086 = vmatprep.subr.bf16.mxu0 %v2085_v49  ;;  %v2099_v7 = vpack.c.bf16 %v87_v41, %v84_v4  ;;  %v57_v41 = vld [vmem:[%s3069_s4] sm:$0xff] }
  0x6e   :  { %2088 = vmatpush3.bf16.msra.mxu0 %v2087_v54 }
  0x6f   :  { %2090 = vmatprep.subr.bf16.mxu0 %v2089_v55 }
  0x72   :  { %2092 = vmatpush3.bf16.msra.mxu0 %v2091_v60 }
  0x73   :  { %2094 = vmatprep.subr.bf16.mxu0 %v2093_v61 }
  0x76   :  { %2096 = vmatpush3.bf16.msra.mxu0 %v2095_v2 }
  0x77   :  { %2098 = vmatprep.subr.bf16.mxu0 %v2097_v3 }
  0x7a   :  { %2100 = vmatpush3.bf16.msra.mxu0 %v2099_v7 }
  0x7b   :  { %2102 = vmatprep.subr.bf16.mxu0 %v2101_v8 }
  0x7e   :  { %2104 = vmatpush3.bf16.msra.mxu0 %v2103_v13 }
  0x7f   :  { %2106 = vmatprep.subr.bf16.mxu0 %v2105_v14 }
  0x82   :  { %2108 = vmatpush3.bf16.msra.mxu0 %v2107_v19 }
  0x83   :  { %2110 = vmatprep.subr.bf16.mxu0 %v2109_v20 }
  0x86   :  { %2112 = vmatpush3.bf16.msra.mxu0 %v2111_v23 }
  0x87   :  { %2178 = vmatprep.subr.bf16.mxu0 %v2664_v38 }
  0x89   :  { %292 = vmatmul.mubr.f32.vlgmr.msra.gmra.mrb[2].mxu0 %v154_v47 }
  0x8a   :  { %2180 = vmatpush3.bf16.msra.mxu0 %v2083_v48  ;;  %447 = vmatprep.mubr.f32.mxu0 %v309_v45 }
  0x8b   :  { %2182 = vmatprep.subr.bf16.mxu0 %v2085_v49 }
  0x8e   :  { %2184 = vmatpush3.bf16.msra.mxu0 %v2087_v54 }
  0x8f   :  { %2186 = vmatprep.subr.bf16.mxu0 %v2089_v55 }
  0x92   :  { %2188 = vmatpush3.bf16.msra.mxu0 %v2091_v60 }
  0x93   :  { %2190 = vmatprep.subr.bf16.mxu0 %v2093_v61  ;;  %v2561_v61 = vmov 0.0  }
  0x94   :  { %1614 = vst [vmem:[#allocation4] sm:$0xff] %v2561_v61  ;;  %892 = vmatprep.mubr.f32.mxu1 %v2561_v61 }
  0x96   :  { %2192 = vmatpush3.bf16.msra.mxu0 %v2095_v2 }
  0x97   :  { %2194 = vmatprep.subr.bf16.mxu0 %v2097_v3 }
  0x9a   :  { %2196 = vmatpush3.bf16.msra.mxu0 %v2099_v7 }
  0x9b   :  { %2198 = vmatprep.subr.bf16.mxu0 %v2101_v8 }
  0x9e   :  { %2200 = vmatpush3.bf16.msra.mxu0 %v2103_v13 }
  0x9f   :  { %2202 = vmatprep.subr.bf16.mxu0 %v2105_v14 }
  0xa2   :  { %2204 = vmatpush3.bf16.msra.mxu0 %v2107_v19 }
  0xa3   :  { %2206 = vmatprep.subr.bf16.mxu0 %v2109_v20 }
  0xa6   :  { %2208 = vmatpush3.bf16.msra.mxu0 %v2111_v23 }
  0xa9   :  { %448 = vmatmul.mubr.f32.vlgmr.msra.gmra.mrb[4].mxu0 %v308_v46 }
  0xaa   :  { %821 = vmatprep.mubr.f32.mxu0 %v2561_v61 }
 0x13c   :  { %v222_v24 = vpop.f32.mrb[0].mxu0  ;;  %v378_v42 = vpop.f32.mrb[0].mxu1 }
 0x13d   :  { %v224_v45 = vpop.f32.mrb[1].mxu0  ;;  %v380_v25 = vpop.f32.mrb[1].mxu1  ;;  %v2696_v29 = vcombine.low %v222_v24, %v222_v24 }
 0x13e   :  { %v2679_v26 = vcombine.low %v222_v24, %v224_v45  ;;  %v456_v27 = vcombine.low %v378_v42, %v380_v25  ;;  %v2685_v28 = vcombine.low %v224_v45, %v224_v45 }
 0x140   :  { %457 = vrot.lane.b32.xlu0 %v456_v27, %s2552_s0  ;;  %487 = vst [vmem:[#allocation5] sm:$0xf] %v2679_v26  ;;  %498 = vrot.lane.b32.xlu1 %v2679_v26, %s2553_s17  ;;  %488 = vst [vmem:[#allocation5 + $0x8] sm:$0xf] %v2685_v28 }
 0x144   :  { %549 = vrot.lane.b32.xlu0 %v2679_v26, %s2554_s18  ;;  %522 = vrot.lane.b32.xlu1 %v2679_v26, %s2555_s19 }
 0x148   :  { %524 = vrot.lane.b32.xlu0 %v2685_v28, %s2555_s19  ;;  %599 = vrot.lane.b32.xlu1 %v2679_v26, %s2556_s20 }
 0x14c   :  { %496 = vrot.lane.b32.xlu0 %v2696_v29, %s2553_s17  ;;  %653 = vrot.lane.b32.xlu1 %v2679_v26, %s2557_s21 }
 0x150   :  { %547 = vrot.lane.b32.xlu0 %v2696_v29, %s2554_s18  ;;  %572 = vrot.lane.b32.xlu1 %v2679_v26, %s2558_s22 }
 0x154   :  { %597 = vrot.lane.b32.xlu0 %v2696_v29, %s2556_s20  ;;  %574 = vrot.lane.b32.xlu1 %v2685_v28, %s2558_s22 }
 0x158   :  { %625 = vrot.lane.b32.xlu1 %v2685_v28, %s2559_s23 }
 0x15c   :  { %v1960_v30 = vpop.f32.mrb[2].mxu0 }
 0x15d   :  { %v1961_v31 = vpop.f32.mrb[3].mxu0 }
 0x15e   :  { %v1962_v32 = vadd.f32 %v1961_v31, %v1960_v30 }
 0x160   :  { %303 = vst.msk [vmem:[#allocation2 + $0x8] sm:$0xf] %vm302_vm0, %v1962_v32  ;;  %vm691_vm0 = vcmask 736256  }
 0x17c   :  { %v1995_v33 = vpop.f32.mrb[4].mxu0 }
 0x17d   :  { %v1996_v34 = vpop.f32.mrb[5].mxu0 }
 0x17e   :  { %v1997_v35 = vadd.f32 %v1996_v34, %v1995_v33 }
 0x180   :  { %459 = vrot.lane.b32.xlu0 %v1997_v35, %s2552_s0 }
 0x1b2   :  { %v2713_v36 = vpop.permute.xlu0 %457  ;;  %v2715_v37 = vpop.permute.xlu1 %498 }
 0x1b3   :  { %v461_v38 = vrot.slane %v2713_v36, 4 }
 0x1b5   :  { %v464_v39 = vsel %vm463_vm3, %v461_v38, %v2713_v36 }
 0x1b6   :  { %473 = vst.msk [vmem:[#allocation2 + $0x8] sm:$0xff] %vm472_vm4, %v464_v39  ;;  %v2722_v40 = vpop.permute.xlu0 %549  ;;  %v523_v43 = vpop.permute.xlu1 %522  ;;  %vm3074_vm4 = vcmask 1041408  }
 0x1ba   :  { %v2724_v44 = vpop.permute.xlu0 %524  ;;  %v2726_v46 = vpop.permute.xlu1 %599 }
 0x1bb   :  { %v533_v47 = vsel %vm532_vm5, %v523_v43, %v2724_v44 }
 0x1bc   :  { %542 = vst [vmem:[#allocation5 + $0x28] sm:$0xf] %v533_v47 }
 0x1bd   :  { %v478_v48 = vld [vmem:[#allocation2 + $0x8] sm:$0xff] }
 0x1be   :  { %576 = vrot.lane.b32.xlu0 %v478_v48, %s2558_s22  ;;  %489 = vst [vmem:[#allocation5 + $0x10] sm:$0xf] %v478_v48  ;;  %526 = vrot.lane.b32.xlu1 %v478_v48, %s2555_s19  ;;  %v497_v49 = vpop.permute.xlu0 %496  ;;  %v494_v50 = vcombine.low %v478_v48, %v478_v48  ;;  %v2732_v51 = vpop.permute.xlu1 %653  ;;  %v484_v52 = vcombine.high %v478_v48, %v478_v48 }
 0x1bf   :  { %v507_v53 = vsel %vm506_vm6, %v497_v49, %v2715_v37 }
 0x1c0   :  { %516 = vst [vmem:[#allocation5] sm:$0xf0] %v507_v53  ;;  %490 = vst [vmem:[#allocation5 + $0x18] sm:$0xf] %v484_v52 }
 0x1c2   :  { %627 = vrot.lane.b32.xlu0 %v478_v48, %s2559_s23  ;;  %500 = vrot.lane.b32.xlu1 %v494_v50, %s2553_s17  ;;  %v548_v54 = vpop.permute.xlu0 %547  ;;  %v573_v55 = vpop.permute.xlu1 %572 }
 0x1c3   :  { %v558_v56 = vsel %vm557_vm7, %v548_v54, %v2722_v40 }
 0x1c4   :  { %567 = vst [vmem:[#allocation5 + $0x28] sm:$0xf0] %v558_v56 }
 0x1c6   :  { %601 = vrot.lane.b32.xlu0 %v494_v50, %s2556_s20  ;;  %551 = vrot.lane.b32.xlu1 %v494_v50, %s2554_s18  ;;  %v598_v57 = vpop.permute.xlu0 %597  ;;  %v575_v58 = vpop.permute.xlu1 %574 }
 0x1c7   :  { %v608_v59 = vsel %vm607_vm8, %v598_v57, %v2726_v46  ;;  %v583_v60 = vsel %vm582_vm9, %v573_v55, %v575_v58 }
 0x1c8   :  { %617 = vst [vmem:[#allocation5 + $0x50] sm:$0xf0] %v608_v59  ;;  %592 = vst [vmem:[#allocation5 + $0x50] sm:$0xf] %v583_v60 }
 0x1ca   :  { %655 = vrot.lane.b32.xlu0 %v494_v50, %s2557_s21  ;;  %623 = vrot.lane.b32.xlu1 %v2679_v26, %s2559_s23  ;;  %v626_v6 = vpop.permute.xlu1 %625 }
 0x1cb   :  { %v713_v42 = vld [vmem:[#allocation5 + $0x28] sm:$0xff] }
 0x1ce   :  { %651 = vrot.lane.b32.xlu0 %v2696_v29, %s2557_s21  ;;  %681 = vrot.lane.b32.xlu1 %v2685_v28, %s2560_s24  ;;  %v708_v28 = vld [vmem:[#allocation5] sm:$0xff] }
 0x1cf   :  { %v2211_v29 = vpack.c.bf16 %v713_v42, %v708_v28  ;;  %v718_v39 = vld [vmem:[#allocation5 + $0x50] sm:$0xff] }
 0x1d2   :  { %683 = vrot.lane.b32.xlu0 %v478_v48, %s2560_s24  ;;  %679 = vrot.lane.b32.xlu1 %v2679_v26, %s2560_s24 }
 0x1d6   :  { %502 = vrot.lane.b32.xlu0 %v478_v48, %s2553_s17 }
 0x1da   :  { %553 = vrot.lane.b32.xlu0 %v478_v48, %s2554_s18 }
 0x1de   :  { %603 = vrot.lane.b32.xlu0 %v478_v48, %s2556_s20 }
 0x1e2   :  { %528 = vrot.lane.b32.xlu0 %v484_v52, %s2555_s19 }
 0x1e6   :  { %578 = vrot.lane.b32.xlu0 %v484_v52, %s2558_s22 }
 0x1ea   :  { %629 = vrot.lane.b32.xlu0 %v484_v52, %s2559_s23 }
 0x1ee   :  { %657 = vrot.lane.b32.xlu0 %v478_v48, %s2557_s21  ;;  %v2821_v48 = vld [vmem:[%s3066_s1] sm:$0xff]  ;;  %s2565_s1 = smov 118  }
 0x1f2   :  { %v460_v62 = vpop.permute.xlu0 %459  ;;  %685 = vrot.lane.b32.xlu0 %v484_v52, %s2560_s24  ;;  %v2563_v52 = vmov 0.0|0.0  }
 0x1f3   :  { %v462_v63 = vrot.slane %v460_v62, 4 }
 0x1f5   :  { %v466_v0 = vsel %vm465_vm10, %v461_v38, %v462_v63 }
 0x1f6   :  { %v467_v1 = vsel %vm463_vm3, %v466_v0, %v460_v62  ;;  %vm520_vm3 = vcmask 801796  }
 0x1f7   :  { %476 = vst.msk [vmem:[#allocation2 + $0x10] sm:$0xff] %vm475_vm12, %v467_v1  ;;  %vm1435_vm12 = vcmask 949248  }
 0x1fe   :  { %v479_v2 = vld [vmem:[#allocation2 + $0x10] sm:$0xff] }
 0x1ff   :  { %530 = vrot.lane.b32.xlu1 %v479_v2, %s2555_s19  ;;  %v622_v3 = vcombine.high %v479_v2, %v479_v2  ;;  %492 = vst.msk [vmem:[#allocation5 + $0x20] sm:$0xf] %vm491_vm13, %v479_v2  ;;  %v495_v4 = vcombine.low %v479_v2, %v479_v2 }
 0x201   :  { %633 = vrot.lane.b32.xlu0 %v622_v3, %s2559_s23 }
 0x203   :  { %580 = vrot.lane.b32.xlu1 %v479_v2, %s2558_s22 }
 0x205   :  { %689 = vrot.lane.b32.xlu0 %v622_v3, %s2560_s24 }
 0x207   :  { %631 = vrot.lane.b32.xlu1 %v479_v2, %s2559_s23 }
 0x20b   :  { %504 = vrot.lane.b32.xlu1 %v495_v4, %s2553_s17 }
 0x20f   :  { %555 = vrot.lane.b32.xlu1 %v495_v4, %s2554_s18 }
 0x213   :  { %605 = vrot.lane.b32.xlu1 %v495_v4, %s2556_s20 }
 0x217   :  { %659 = vrot.lane.b32.xlu1 %v495_v4, %s2557_s21 }
 0x21b   :  { %687 = vrot.lane.b32.xlu1 %v479_v2, %s2560_s24 }
 0x21f   :  { %661 = vrot.lane.b32.xlu1 %v479_v2, %s2557_s21 }
 0x223   :  { %735 = vperm.xlu1 %2482, %v57_v41  }
 0x230   :  { %v2786_v7 = vpop.permute.xlu0 %576  ;;  %v2788_v8 = vpop.permute.xlu1 %526 }
 0x231   :  { %v584_v9 = vsel %vm582_vm9, %v575_v58, %v2786_v7  ;;  %v534_v10 = vsel %vm532_vm5, %v2724_v44, %v2788_v8 }
 0x232   :  { %593 = vst [vmem:[#allocation5 + $0x58] sm:$0xf] %v584_v9  ;;  %543 = vst [vmem:[#allocation5 + $0x30] sm:$0xf] %v534_v10 }
 0x234   :  { %v2795_v11 = vpop.permute.xlu0 %627  ;;  %v501_v12 = vpop.permute.xlu1 %500 }
 0x235   :  { %v637_v13 = vsel %vm635_vm14, %v626_v6, %v2795_v11  ;;  %v508_v14 = vsel %vm506_vm6, %v2715_v37, %v501_v12 }
 0x236   :  { %647 = vst [vmem:[#allocation5 + $0x80] sm:$0xf] %v637_v13  ;;  %517 = vst [vmem:[#allocation5 + $0x8] sm:$0xf0] %v508_v14 }
 0x238   :  { %v602_v15 = vpop.permute.xlu0 %601  ;;  %v552_v16 = vpop.permute.xlu1 %551 }
 0x239   :  { %v609_v17 = vsel %vm607_vm8, %v2726_v46, %v602_v15  ;;  %v559_v18 = vsel %vm557_vm7, %v2722_v40, %v552_v16 }
 0x23a   :  { %618 = vst [vmem:[#allocation5 + $0x58] sm:$0xf0] %v609_v17  ;;  %568 = vst [vmem:[#allocation5 + $0x30] sm:$0xf0] %v559_v18 }
 0x23c   :  { %v2805_v19 = vpop.permute.xlu0 %655  ;;  %v624_v20 = vpop.permute.xlu1 %623 }
 0x23d   :  { %v665_v21 = vsel %vm663_vm15, %v2732_v51, %v2805_v19  ;;  %v636_v22 = vsel %vm635_vm14, %v624_v20, %v626_v6  ;;  %v709_v25 = vld [vmem:[#allocation5 + $0x8] sm:$0xff] }
 0x23e   :  { %675 = vst [vmem:[#allocation5 + $0x80] sm:$0xf0] %v665_v21  ;;  %646 = vst [vmem:[#allocation5 + $0x78] sm:$0xf] %v636_v22 }
 0x240   :  { %v652_v23 = vpop.permute.xlu0 %651  ;;  %v682_v24 = vpop.permute.xlu1 %681 }
 0x241   :  { %v664_v45 = vsel %vm663_vm15, %v652_v23, %v2732_v51  ;;  %v714_v26 = vld [vmem:[#allocation5 + $0x30] sm:$0xff]  ;;  %v719_v34 = vld [vmem:[#allocation5 + $0x58] sm:$0xff] }
 0x242   :  { %674 = vst [vmem:[#allocation5 + $0x78] sm:$0xf0] %v664_v45  ;;  %v2209_v27 = vpack.c.bf16 %v714_v26, %v709_v25 }
 0x244   :  { %v684_v30 = vpop.permute.xlu0 %683  ;;  %2210 = vmatprep.subr.bf16.mxu0 %v2209_v27  ;;  %v680_v31 = vpop.permute.xlu1 %679 }
 0x245   :  { %v693_v32 = vsel %vm691_vm0, %v682_v24, %v684_v30  ;;  %v692_v33 = vsel %vm691_vm0, %v680_v31, %v682_v24  ;;  %2212 = vmatpush1.bf16.msra.mxu0 %v2211_v29  ;;  %v724_v35 = vld [vmem:[#allocation5 + $0x80] sm:$0xff] }
 0x246   :  { %703 = vst [vmem:[#allocation5 + $0xa8] sm:$0xf] %v693_v32  ;;  %702 = vst [vmem:[#allocation5 + $0xa0] sm:$0xf] %v692_v33  ;;  %v2213_v36 = vpack.c.bf16 %v724_v35, %v719_v34  ;;  %v975_v34 = vld [vmem:[#allocation9 + $0x8] sm:$0xff]  ;;  %v977_v35 = vld [vmem:[#allocation9 + $0x18] sm:$0xff] }
 0x248   :  { %v503_v37 = vpop.permute.xlu0 %502  ;;  %2214 = vmatprep.subr.bf16.mxu0 %v2213_v36  ;;  %v974_v36 = vld [vmem:[#allocation9] sm:$0xff] }
 0x249   :  { %v509_v38 = vsel %vm506_vm6, %v501_v12, %v503_v37  ;;  %v723_v40 = vld [vmem:[#allocation5 + $0x78] sm:$0xff] }
 0x24a   :  { %518 = vst [vmem:[#allocation5 + $0x10] sm:$0xf0] %v509_v38  ;;  %v2215_v43 = vpack.c.bf16 %v723_v40, %v718_v39  ;;  %v979_v39 = vld [vmem:[#allocation9 + $0x28] sm:$0xff]  ;;  %v981_v40 = vld [vmem:[#allocation9 + $0x38] sm:$0xff] }
 0x24c   :  { %v554_v44 = vpop.permute.xlu0 %553  ;;  %2216 = vmatpush1.bf16.msra.mxu0 %v2215_v43  ;;  %v2231_v43 = vpack.c.bf16 %v977_v35, %v975_v34  ;;  %v1010_v35 = vld [vmem:[#allocation9 + $0x120] sm:$0xff] }
 0x24d   :  { %v560_v46 = vsel %vm557_vm7, %v552_v16, %v554_v44  ;;  %v729_v47 = vld [vmem:[#allocation5 + $0xa8] sm:$0xf]  ;;  %v728_v49 = vld [vmem:[#allocation5 + $0xa0] sm:$0xf] }
 0x24e   :  { %569 = vst [vmem:[#allocation5 + $0x38] sm:$0xf0] %v560_v46  ;;  %1913 = vmatprep.subr.msk.mxu0 %vm465_vm10, %v729_v47  ;;  %v978_v46 = vld [vmem:[#allocation9 + $0x20] sm:$0xff] }
 0x250   :  { %v604_v50 = vpop.permute.xlu0 %603  ;;  %1914 = vmatpush1.msk.msra.mxu0 %vm465_vm10, %v728_v49  ;;  %v2235_v49 = vpack.c.bf16 %v981_v40, %v979_v39 }
 0x251   :  { %v610_v51 = vsel %vm607_vm8, %v602_v15, %v604_v50  ;;  %1915 = vmatmul.mubr.msk.f32.vlgmr.msra.gmra.mrb[6].mxu0 %vm738_vm1, %v2821_v48  ;;  %2225 = vmatprep.subr.bf16.mxu0 %v2563_v52  ;;  %v710_v22 = vld [vmem:[#allocation5 + $0x10] sm:$0xff] }
 0x252   :  { %619 = vst [vmem:[#allocation5 + $0x60] sm:$0xf0] %v610_v51  ;;  %2014 = vmatprep.mubr.msk.f32.mxu0 %vm2564_vm2, %v2561_v61  ;;  %v983_v51 = vld [vmem:[#allocation9 + $0x48] sm:$0xff] }
 0x254   :  { %v529_v53 = vpop.permute.xlu0 %528 }
 0x255   :  { %v535_v54 = vsel %vm532_vm5, %v2788_v8, %v529_v53 }
 0x256   :  { %544 = vst [vmem:[#allocation5 + $0x38] sm:$0xf] %v535_v54 }
 0x258   :  { %v579_v55 = vpop.permute.xlu0 %578 }
 0x259   :  { %v585_v56 = vsel %vm582_vm9, %v2786_v7, %v579_v55 }
 0x25a   :  { %594 = vst [vmem:[#allocation5 + $0x60] sm:$0xf] %v585_v56 }
 0x25c   :  { %v630_v57 = vpop.permute.xlu0 %629 }
 0x25d   :  { %v638_v58 = vsel %vm635_vm14, %v2795_v11, %v630_v57  ;;  %v715_v16 = vld [vmem:[#allocation5 + $0x38] sm:$0xff] }
 0x25e   :  { %648 = vst [vmem:[#allocation5 + $0x88] sm:$0xf] %v638_v58  ;;  %v2219_v23 = vpack.c.bf16 %v715_v16, %v710_v22  ;;  %v999_v16 = vld [vmem:[#allocation9 + $0xc8] sm:$0xff]  ;;  %v1005_v22 = vld [vmem:[#allocation9 + $0xf8] sm:$0xff] }
 0x260   :  { %v658_v59 = vpop.permute.xlu0 %657 }
 0x261   :  { %v666_v60 = vsel %vm663_vm15, %v2805_v19, %v658_v59  ;;  %v720_v32 = vld [vmem:[#allocation5 + $0x60] sm:$0xff] }
 0x262   :  { %676 = vst [vmem:[#allocation5 + $0x88] sm:$0xf0] %v666_v60  ;;  %v984_v60 = vld [vmem:[#allocation9 + $0x50] sm:$0xff] }
 0x264   :  { %v686_v62 = vpop.permute.xlu0 %685 }
 0x265   :  { %v694_v63 = vsel %vm691_vm0, %v684_v30, %v686_v62 }
 0x266   :  { %704 = vst [vmem:[#allocation5 + $0xb0] sm:$0xf] %v694_v63  ;;  %v989_v63 = vld [vmem:[#allocation9 + $0x78] sm:$0xff] }
 0x269   :  { %v725_v27 = vld [vmem:[#allocation5 + $0x88] sm:$0xff] }
 0x26a   :  { %v2223_v33 = vpack.c.bf16 %v725_v27, %v720_v32  ;;  %v1013_v32 = vld [vmem:[#allocation9 + $0x138] sm:$0xff] }
 0x26d   :  { %v730_v47 = vld [vmem:[#allocation5 + $0xb0] sm:$0xf] }
 0x271   :  { %v531_v0 = vpop.permute.xlu1 %530 }
 0x272   :  { %v536_v1 = vsel %vm532_vm5, %v529_v53, %v531_v0  ;;  %546 = vst.msk [vmem:[#allocation5 + $0x48] sm:$0xf] %vm491_vm13, %v531_v0 }
 0x273   :  { %545 = vst [vmem:[#allocation5 + $0x40] sm:$0xf] %v536_v1  ;;  %v634_v4 = vpop.permute.xlu0 %633 }
 0x275   :  { %v581_v2 = vpop.permute.xlu1 %580 }
 0x276   :  { %v586_v3 = vsel %vm582_vm9, %v579_v55, %v581_v2  ;;  %596 = vst.msk [vmem:[#allocation5 + $0x70] sm:$0xf] %vm491_vm13, %v581_v2  ;;  %v985_v55 = vld [vmem:[#allocation9 + $0x58] sm:$0xff]  ;;  %vm3075_vm9 = vcmask 588800  }
 0x277   :  { %595 = vst [vmem:[#allocation5 + $0x68] sm:$0xf] %v586_v3  ;;  %v690_v24 = vpop.permute.xlu0 %689  ;;  %v2239_v58 = vpack.c.bf16 %v985_v55, %v983_v51  ;;  %v986_v3 = vld [vmem:[#allocation9 + $0x60] sm:$0xff]  ;;  %v1025_v55 = vld [vmem:[#allocation9 + $0x198] sm:$0xff] }
 0x278   :  { %v1018_v51 = vld [vmem:[#allocation9 + $0x160] sm:$0xff] }
 0x279   :  { %v632_v41 = vpop.permute.xlu1 %631 }
 0x27a   :  { %v639_v5 = vsel %vm635_vm14, %v630_v57, %v632_v41  ;;  %v640_v6 = vsel %vm635_vm14, %v632_v41, %v634_v4  ;;  %v988_v4 = vld [vmem:[#allocation9 + $0x70] sm:$0xff]  ;;  %v991_v41 = vld [vmem:[#allocation9 + $0x88] sm:$0xff]  ;;  %vm1454_vm14 = vcmask 875520  }
 0x27b   :  { %649 = vst [vmem:[#allocation5 + $0x90] sm:$0xf] %v639_v5  ;;  %650 = vst.msk [vmem:[#allocation5 + $0x98] sm:$0xf] %vm491_vm13, %v640_v6  ;;  %v993_v5 = vld [vmem:[#allocation9 + $0x98] sm:$0xff]  ;;  %v2245_v6 = vpack.c.bf16 %v988_v4, %v986_v3  ;;  %v1031_v3 = vld [vmem:[#allocation9 + $0x1c8] sm:$0xff] }
 0x27c   :  { %v1033_v4 = vld [vmem:[#allocation9 + $0x1d8] sm:$0xff] }
 0x27d   :  { %v505_v7 = vpop.permute.xlu1 %504 }
 0x27e   :  { %v510_v8 = vsel %vm506_vm6, %v503_v37, %v505_v7  ;;  %521 = vst.msk [vmem:[#allocation5 + $0x20] sm:$0xf0] %vm520_vm3, %v505_v7  ;;  %v976_v37 = vld [vmem:[#allocation9 + $0x10] sm:$0xff]  ;;  %v2247_v7 = vpack.c.bf16 %v993_v5, %v991_v41  ;;  %v2287_v5 = vpack.c.bf16 %v1033_v4, %v1031_v3  ;;  %v1069_v3 = vld [vmem:[#allocation9 + $0x2f8] sm:$0xff] }
 0x27f   :  { %519 = vst [vmem:[#allocation5 + $0x18] sm:$0xf0] %v510_v8  ;;  %v990_v8 = vld [vmem:[#allocation9 + $0x80] sm:$0xff] }
 0x281   :  { %v556_v9 = vpop.permute.xlu1 %555 }
 0x282   :  { %v561_v10 = vsel %vm557_vm7, %v554_v44, %v556_v9  ;;  %571 = vst.msk [vmem:[#allocation5 + $0x48] sm:$0xf0] %vm520_vm3, %v556_v9  ;;  %v2233_v44 = vpack.c.bf16 %v976_v37, %v974_v36  ;;  %v992_v9 = vld [vmem:[#allocation9 + $0x90] sm:$0xff]  ;;  %v1015_v37 = vld [vmem:[#allocation9 + $0x148] sm:$0xff]  ;;  %vm1128_vm7 = vcmask 801792  }
 0x283   :  { %570 = vst [vmem:[#allocation5 + $0x40] sm:$0xf0] %v561_v10  ;;  %v995_v10 = vld [vmem:[#allocation9 + $0xa8] sm:$0xff]  ;;  %v1012_v36 = vld [vmem:[#allocation9 + $0x130] sm:$0xff] }
 0x284   :  { %v2269_v39 = vpack.c.bf16 %v1012_v36, %v1010_v35  ;;  %v1048_v35 = vld [vmem:[#allocation9 + $0x250] sm:$0xff]  ;;  %v1051_v36 = vld [vmem:[#allocation9 + $0x268] sm:$0xff] }
 0x285   :  { %v606_v11 = vpop.permute.xlu1 %605  ;;  %v712_v14 = vld [vmem:[#allocation5 + $0x20] sm:$0xff] }
 0x286   :  { %v611_v12 = vsel %vm607_vm8, %v604_v50, %v606_v11  ;;  %621 = vst.msk [vmem:[#allocation5 + $0x70] sm:$0xf0] %vm520_vm3, %v606_v11  ;;  %v711_v19 = vld [vmem:[#allocation5 + $0x18] sm:$0xff]  ;;  %v980_v50 = vld [vmem:[#allocation9 + $0x30] sm:$0xff]  ;;  %v997_v11 = vld [vmem:[#allocation9 + $0xb8] sm:$0xff] }
 0x287   :  { %620 = vst [vmem:[#allocation5 + $0x68] sm:$0xf0] %v611_v12  ;;  %v2237_v57 = vpack.c.bf16 %v980_v50, %v978_v46  ;;  %v2249_v12 = vpack.c.bf16 %v992_v9, %v990_v8  ;;  %v1019_v46 = vld [vmem:[#allocation9 + $0x168] sm:$0xff]  ;;  %v1037_v9 = vld [vmem:[#allocation9 + $0x1f8] sm:$0xff] }
 0x288   :  { %v1035_v8 = vld [vmem:[#allocation9 + $0x1e8] sm:$0xff] }
 0x289   :  { %v660_v13 = vpop.permute.xlu1 %659  ;;  %v717_v15 = vld [vmem:[#allocation5 + $0x48] sm:$0xff] }
 0x28a   :  { %v667_v17 = vsel %vm663_vm15, %v658_v59, %v660_v13  ;;  %v2226_v18 = vpack.c.bf16 %v717_v15, %v712_v14  ;;  %v716_v20 = vld [vmem:[#allocation5 + $0x40] sm:$0xff]  ;;  %v982_v59 = vld [vmem:[#allocation9 + $0x40] sm:$0xff]  ;;  %v996_v15 = vld [vmem:[#allocation9 + $0xb0] sm:$0xff] }
 0x28b   :  { %677 = vst [vmem:[#allocation5 + $0x90] sm:$0xf0] %v667_v17  ;;  %v2217_v21 = vpack.c.bf16 %v716_v20, %v711_v19  ;;  %v2241_v1 = vpack.c.bf16 %v984_v60, %v982_v59  ;;  %v994_v14 = vld [vmem:[#allocation9 + $0xa0] sm:$0xff]  ;;  %v1000_v20 = vld [vmem:[#allocation9 + $0xd0] sm:$0xff]  ;;  %v1027_v60 = vld [vmem:[#allocation9 + $0x1a8] sm:$0xff] }
 0x28c   :  { %2227 = vmatpush3.bf16.msra.mxu0 %v2226_v18  ;;  %v2253_v17 = vpack.c.bf16 %v996_v15, %v994_v14  ;;  %v998_v19 = vld [vmem:[#allocation9 + $0xc0] sm:$0xff]  ;;  %v1024_v59 = vld [vmem:[#allocation9 + $0x190] sm:$0xff]  ;;  %v1039_v14 = vld [vmem:[#allocation9 + $0x208] sm:$0xff] }
 0x28d   :  { %v688_v42 = vpop.permute.xlu1 %687  ;;  %2218 = vmatprep.subr.bf16.mxu1 %v2217_v21  ;;  %2228 = vmatprep.subr.bf16.mxu0 %v2563_v52  ;;  %v722_v53 = vld [vmem:[#allocation5 + $0x70] sm:$0xff]  ;;  %v1003_v21 = vld [vmem:[#allocation9 + $0xe8] sm:$0xff] }
 0x28e   :  { %v695_v45 = vsel %vm691_vm0, %v686_v62, %v688_v42  ;;  %v696_v25 = vsel %vm691_vm0, %v688_v42, %v690_v24  ;;  %2220 = vmatpush1.bf16.msra.mxu1 %v2219_v23  ;;  %v721_v29 = vld [vmem:[#allocation5 + $0x68] sm:$0xff]  ;;  %v987_v62 = vld [vmem:[#allocation9 + $0x68] sm:$0xff]  ;;  %v2257_v23 = vpack.c.bf16 %v1000_v20, %v998_v19  ;;  %v2259_v24 = vpack.c.bf16 %v1005_v22, %v1003_v21  ;;  %v1002_v42 = vld [vmem:[#allocation9 + $0xe0] sm:$0xff] }
 0x28f   :  { %705 = vst [vmem:[#allocation5 + $0xb8] sm:$0xf] %v695_v45  ;;  %706 = vst.msk [vmem:[#allocation5 + $0xc0] sm:$0xf] %vm491_vm13, %v696_v25  ;;  %v2243_v2 = vpack.c.bf16 %v989_v63, %v987_v62  ;;  %v1004_v45 = vld [vmem:[#allocation9 + $0xf0] sm:$0xff]  ;;  %v1007_v25 = vld [vmem:[#allocation9 + $0x108] sm:$0xff] }
 0x290   :  { %v2261_v27 = vpack.c.bf16 %v1004_v45, %v1002_v42  ;;  %v1029_v62 = vld [vmem:[#allocation9 + $0x1b8] sm:$0xff]  ;;  %v1038_v21 = vld [vmem:[#allocation9 + $0x200] sm:$0xff]  ;;  %v1040_v22 = vld [vmem:[#allocation9 + $0x210] sm:$0xff]  ;;  %vm1425_vm13 = vcmask 957440  }
 0x291   :  { %v662_v26 = vpop.permute.xlu1 %661  ;;  %v1041_v15 = vld [vmem:[#allocation9 + $0x218] sm:$0xff] }
 0x292   :  { %v668_v28 = vsel %vm663_vm15, %v660_v13, %v662_v26  ;;  %v726_v30 = vld [vmem:[#allocation5 + $0x90] sm:$0xff]  ;;  %v2251_v13 = vpack.c.bf16 %v997_v11, %v995_v10  ;;  %v2291_v11 = vpack.c.bf16 %v1037_v9, %v1035_v8  ;;  %vm3076_vm15 = vcmask 867328  }
 0x293   :  { %678 = vst.msk [vmem:[#allocation5 + $0x98] sm:$0xf0] %vm520_vm3, %v668_v28  ;;  %v2221_v31 = vpack.c.bf16 %v726_v30, %v721_v29  ;;  %v1009_v26 = vld [vmem:[#allocation9 + $0x118] sm:$0xff]  ;;  %v1006_v29 = vld [vmem:[#allocation9 + $0x100] sm:$0xff]  ;;  %v1008_v30 = vld [vmem:[#allocation9 + $0x110] sm:$0xff] }
 0x294   :  { %v2263_v28 = vpack.c.bf16 %v1009_v26, %v1007_v25  ;;  %v1045_v42 = vld [vmem:[#allocation9 + $0x238] sm:$0xff]  ;;  %v2297_v26 = vpack.c.bf16 %v1040_v22, %v1038_v21 }
 0x295   :  { %2222 = vmatprep.subr.bf16.mxu1 %v2221_v31  ;;  %v1011_v31 = vld [vmem:[#allocation9 + $0x128] sm:$0xff]  ;;  %v1073_v8 = vld [vmem:[#allocation9 + $0x318] sm:$0xff] }
 0x296   :  { %2224 = vmatpush1.bf16.msra.mxu1 %v2223_v33  ;;  %v731_v38 = vld [vmem:[#allocation5 + $0xb8] sm:$0xf]  ;;  %v732_v0 = vld [vmem:[#allocation5 + $0xc0] sm:$0xf]  ;;  %v2265_v33 = vpack.c.bf16 %v1008_v30, %v1006_v29  ;;  %v2267_v34 = vpack.c.bf16 %v1013_v32, %v1011_v31  ;;  %v1044_v29 = vld [vmem:[#allocation9 + $0x230] sm:$0xff] }
 0x297   :  { %1916 = vmatprep.subr.msk.mxu1 %vm465_vm10, %v731_v38  ;;  %v1017_v38 = vld [vmem:[#allocation9 + $0x158] sm:$0xff]  ;;  %v1047_v30 = vld [vmem:[#allocation9 + $0x248] sm:$0xff] }
 0x298   :  { %v2271_v40 = vpack.c.bf16 %v1017_v38, %v1015_v37  ;;  %v1049_v31 = vld [vmem:[#allocation9 + $0x258] sm:$0xff] }
 0x299   :  { %v1053_v37 = vld [vmem:[#allocation9 + $0x278] sm:$0xff] }
 0x29a   :  { %1917 = vmatpush1.msk.msra.mxu1 %vm465_vm10, %v730_v47  ;;  %v727_v54 = vld [vmem:[#allocation5 + $0x98] sm:$0xff]  ;;  %v1021_v47 = vld [vmem:[#allocation9 + $0x178] sm:$0xff] }
 0x29b   :  { %1918 = vmatmul.mubr.msk.f32.vlgmr.msra.gmra.mrb[2].mxu1 %vm738_vm1, %v2821_v48  ;;  %v2229_v56 = vpack.c.bf16 %v727_v54, %v722_v53  ;;  %2232 = vmatprep.subr.bf16.mxu1 %v2231_v43  ;;  %v1014_v43 = vld [vmem:[#allocation9 + $0x140] sm:$0xff]  ;;  %v2275_v50 = vpack.c.bf16 %v1021_v47, %v1019_v46  ;;  %v1020_v53 = vld [vmem:[#allocation9 + $0x170] sm:$0xff]  ;;  %v1023_v54 = vld [vmem:[#allocation9 + $0x188] sm:$0xff] }
 0x29c   :  { %2234 = vmatpush1.bf16.msra.mxu1 %v2233_v44  ;;  %v1016_v44 = vld [vmem:[#allocation9 + $0x150] sm:$0xff]  ;;  %v1057_v46 = vld [vmem:[#allocation9 + $0x298] sm:$0xff] }
 0x29d   :  { %2230 = vmatpush3.bf16.msra.mxu0 %v2229_v56  ;;  %2236 = vmatprep.subr.bf16.mxu1 %v2235_v49  ;;  %v2273_v49 = vpack.c.bf16 %v1016_v44, %v1014_v43  ;;  %v2277_v56 = vpack.c.bf16 %v1020_v53, %v1018_v51  ;;  %v1052_v43 = vld [vmem:[#allocation9 + $0x270] sm:$0xff]  ;;  %v1055_v44 = vld [vmem:[#allocation9 + $0x288] sm:$0xff] }
 0x29e   :  { %2012 = vmatprep.subr.mxu0 %v2561_v61  ;;  %v1056_v51 = vld [vmem:[#allocation9 + $0x290] sm:$0xff]  ;;  %v1059_v53 = vld [vmem:[#allocation9 + $0x2a8] sm:$0xff] }
 0x2a0   :  { %2238 = vmatpush1.bf16.msra.mxu1 %v2237_v57  ;;  %v2279_v57 = vpack.c.bf16 %v1025_v55, %v1023_v54  ;;  %v1061_v54 = vld [vmem:[#allocation9 + $0x2b8] sm:$0xff] }
 0x2a1   :  { %2013 = vmatpush3.msk.msra.mxu0 %vm465_vm10, %v732_v0  ;;  %2240 = vmatprep.subr.bf16.mxu1 %v2239_v58  ;;  %v1022_v58 = vld [vmem:[#allocation9 + $0x180] sm:$0xff]  ;;  %v2283_v0 = vpack.c.bf16 %v1029_v62, %v1027_v60  ;;  %v1065_v60 = vld [vmem:[#allocation9 + $0x2d8] sm:$0xff]  ;;  %vm1389_vm10 = vcmask 408576  }
 0x2a2   :  { %2015 = vmatmul.mubr.msk.f32.vlgmr.msra.gmra.mrb[8].mxu0 %vm738_vm1, %v2821_v48  ;;  %v1001_v48 = vld [vmem:[#allocation9 + $0xd8] sm:$0xff]  ;;  %v2281_v63 = vpack.c.bf16 %v1024_v59, %v1022_v58  ;;  %v1060_v58 = vld [vmem:[#allocation9 + $0x2b0] sm:$0xff]  ;;  %v1063_v59 = vld [vmem:[#allocation9 + $0x2c8] sm:$0xff] }
 0x2a3   :  { %1560 = vmatprep.mubr.f32.mxu0 %v2561_v61  ;;  %v2255_v18 = vpack.c.bf16 %v1001_v48, %v999_v16  ;;  %v2295_v48 = vpack.c.bf16 %v1041_v15, %v1039_v14  ;;  %v1077_v14 = vld [vmem:[#allocation9 + $0x338] sm:$0xff] }
 0x2a4   :  { %2242 = vmatpush1.bf16.msra.mxu1 %v2241_v1  ;;  %v1026_v1 = vld [vmem:[#allocation9 + $0x1a0] sm:$0xff] }
 0x2a5   :  { %2244 = vmatprep.subr.bf16.mxu1 %v2243_v2  ;;  %v1028_v2 = vld [vmem:[#allocation9 + $0x1b0] sm:$0xff] }
 0x2a6   :  { %v2285_v41 = vpack.c.bf16 %v1028_v2, %v1026_v1  ;;  %v1064_v1 = vld [vmem:[#allocation9 + $0x2d0] sm:$0xff]  ;;  %v1067_v2 = vld [vmem:[#allocation9 + $0x2e8] sm:$0xff] }
 0x2a8   :  { %2246 = vmatpush1.bf16.msra.mxu1 %v2245_v6  ;;  %v1030_v6 = vld [vmem:[#allocation9 + $0x1c0] sm:$0xff] }
 0x2a9   :  { %2248 = vmatprep.subr.bf16.mxu1 %v2247_v7  ;;  %v1032_v7 = vld [vmem:[#allocation9 + $0x1d0] sm:$0xff] }
 0x2aa   :  { %v2289_v10 = vpack.c.bf16 %v1032_v7, %v1030_v6  ;;  %v1068_v6 = vld [vmem:[#allocation9 + $0x2f0] sm:$0xff]  ;;  %v1071_v7 = vld [vmem:[#allocation9 + $0x308] sm:$0xff] }
 0x2ac   :  { %2250 = vmatpush1.bf16.msra.mxu1 %v2249_v12  ;;  %v1034_v12 = vld [vmem:[#allocation9 + $0x1e0] sm:$0xff] }
 0x2ad   :  { %2252 = vmatprep.subr.bf16.mxu1 %v2251_v13  ;;  %v1036_v13 = vld [vmem:[#allocation9 + $0x1f0] sm:$0xff] }
 0x2ae   :  { %v2293_v16 = vpack.c.bf16 %v1036_v13, %v1034_v12  ;;  %v1072_v12 = vld [vmem:[#allocation9 + $0x310] sm:$0xff]  ;;  %v1075_v13 = vld [vmem:[#allocation9 + $0x328] sm:$0xff] }
 0x2b0   :  { %2254 = vmatpush1.bf16.msra.mxu1 %v2253_v17  ;;  %v2867_v17 = vpop.permute.xlu1 %735 }
 0x2b1   :  { %2256 = vmatprep.subr.bf16.mxu1 %v2255_v18 }
 0x2b4   :  { %2258 = vmatpush1.bf16.msra.mxu1 %v2257_v23 }
 0x2b5   :  { %2260 = vmatprep.subr.bf16.mxu1 %v2259_v24  ;;  %v1043_v24 = vld [vmem:[#allocation9 + $0x228] sm:$0xff] }
 0x2b8   :  { %2262 = vmatpush1.bf16.msra.mxu1 %v2261_v27  ;;  %v2299_v27 = vpack.c.bf16 %v1045_v42, %v1043_v24  ;;  %v1080_v24 = vld [vmem:[#allocation9 + $0x350] sm:$0xff]  ;;  %v1083_v42 = vld [vmem:[#allocation9 + $0x368] sm:$0xff] }
 0x2b9   :  { %2264 = vmatprep.subr.bf16.mxu1 %v2263_v28  ;;  %v1042_v28 = vld [vmem:[#allocation9 + $0x220] sm:$0xff] }
 0x2ba   :  { %v2301_v32 = vpack.c.bf16 %v1044_v29, %v1042_v28  ;;  %v1084_v28 = vld [vmem:[#allocation9 + $0x370] sm:$0xff]  ;;  %v1087_v29 = vld [vmem:[#allocation9 + $0x388] sm:$0xff] }
 0x2bc   :  { %2266 = vmatpush1.bf16.msra.mxu1 %v2265_v33  ;;  %v2303_v33 = vpack.c.bf16 %v1049_v31, %v1047_v30  ;;  %v1089_v30 = vld [vmem:[#allocation9 + $0x398] sm:$0xff] }
 0x2bd   :  { %2268 = vmatprep.subr.bf16.mxu1 %v2267_v34  ;;  %v1046_v34 = vld [vmem:[#allocation9 + $0x240] sm:$0xff] }
 0x2be   :  { %v2305_v38 = vpack.c.bf16 %v1048_v35, %v1046_v34  ;;  %v1088_v34 = vld [vmem:[#allocation9 + $0x390] sm:$0xff]  ;;  %v1091_v35 = vld [vmem:[#allocation9 + $0x3a8] sm:$0xff] }
 0x2c0   :  { %2270 = vmatpush1.bf16.msra.mxu1 %v2269_v39  ;;  %v2307_v39 = vpack.c.bf16 %v1053_v37, %v1051_v36  ;;  %v1093_v36 = vld [vmem:[#allocation9 + $0x3b8] sm:$0xff] }
 0x2c1   :  { %2272 = vmatprep.subr.bf16.mxu1 %v2271_v40  ;;  %v1050_v40 = vld [vmem:[#allocation9 + $0x260] sm:$0xff] }
 0x2c2   :  { %v2309_v47 = vpack.c.bf16 %v1052_v43, %v1050_v40  ;;  %v1092_v40 = vld [vmem:[#allocation9 + $0x3b0] sm:$0xff]  ;;  %v1095_v43 = vld [vmem:[#allocation9 + $0x3c8] sm:$0xff] }
 0x2c4   :  { %2274 = vmatpush1.bf16.msra.mxu1 %v2273_v49  ;;  %v2311_v49 = vpack.c.bf16 %v1057_v46, %v1055_v44  ;;  %v1097_v44 = vld [vmem:[#allocation9 + $0x3d8] sm:$0xff] }
 0x2c5   :  { %2276 = vmatprep.subr.bf16.mxu1 %v2275_v50  ;;  %v1054_v50 = vld [vmem:[#allocation9 + $0x280] sm:$0xff] }
 0x2c6   :  { %v2313_v55 = vpack.c.bf16 %v1056_v51, %v1054_v50  ;;  %v1096_v50 = vld [vmem:[#allocation9 + $0x3d0] sm:$0xff]  ;;  %v1099_v51 = vld [vmem:[#allocation9 + $0x3e8] sm:$0xff] }
 0x2c8   :  { %2278 = vmatpush1.bf16.msra.mxu1 %v2277_v56  ;;  %v2315_v56 = vpack.c.bf16 %v1061_v54, %v1059_v53  ;;  %v1101_v53 = vld [vmem:[#allocation9 + $0x3f8] sm:$0xff] }
 0x2c9   :  { %2280 = vmatprep.subr.bf16.mxu1 %v2279_v57  ;;  %v1058_v57 = vld [vmem:[#allocation9 + $0x2a0] sm:$0xff] }
 0x2ca   :  { %v2317_v62 = vpack.c.bf16 %v1060_v58, %v1058_v57  ;;  %v1100_v57 = vld [vmem:[#allocation9 + $0x3f0] sm:$0xff]  ;;  %v1103_v58 = vld [vmem:[#allocation9 + $0x408] sm:$0xff] }
 0x2cc   :  { %2282 = vmatpush1.bf16.msra.mxu1 %v2281_v63  ;;  %v2319_v63 = vpack.c.bf16 %v1065_v60, %v1063_v59  ;;  %v1105_v59 = vld [vmem:[#allocation9 + $0x418] sm:$0xff] }
 0x2cd   :  { %2284 = vmatprep.subr.bf16.mxu1 %v2283_v0  ;;  %v1062_v0 = vld [vmem:[#allocation9 + $0x2c0] sm:$0xff] }
 0x2ce   :  { %v2321_v4 = vpack.c.bf16 %v1064_v1, %v1062_v0 }
 0x2d0   :  { %2286 = vmatpush1.bf16.msra.mxu1 %v2285_v41  ;;  %v2323_v41 = vpack.c.bf16 %v1069_v3, %v1067_v2  ;;  %v1102_v2 = vld [vmem:[#allocation9 + $0x400] sm:$0xff]  ;;  %v1104_v3 = vld [vmem:[#allocation9 + $0x410] sm:$0xff] }
 0x2d1   :  { %2288 = vmatprep.subr.bf16.mxu1 %v2287_v5  ;;  %v1066_v5 = vld [vmem:[#allocation9 + $0x2e0] sm:$0xff] }
 0x2d2   :  { %v2325_v9 = vpack.c.bf16 %v1068_v6, %v1066_v5  ;;  %v1109_v5 = vld [vmem:[#allocation9 + $0x438] sm:$0xff] }
 0x2d4   :  { %2290 = vmatpush1.bf16.msra.mxu1 %v2289_v10  ;;  %v2327_v10 = vpack.c.bf16 %v1073_v8, %v1071_v7  ;;  %v2361_v7 = vpack.c.bf16 %v1104_v3, %v1102_v2 }
 0x2d5   :  { %2292 = vmatprep.subr.bf16.mxu1 %v2291_v11  ;;  %v1070_v11 = vld [vmem:[#allocation9 + $0x300] sm:$0xff] }
 0x2d6   :  { %v2329_v15 = vpack.c.bf16 %v1072_v12, %v1070_v11  ;;  %v1108_v11 = vld [vmem:[#allocation9 + $0x430] sm:$0xff]  ;;  %v1111_v12 = vld [vmem:[#allocation9 + $0x448] sm:$0xff] }
 0x2d8   :  { %2294 = vmatpush1.bf16.msra.mxu1 %v2293_v16  ;;  %v2331_v16 = vpack.c.bf16 %v1077_v14, %v1075_v13  ;;  %v1113_v13 = vld [vmem:[#allocation9 + $0x458] sm:$0xff] }
 0x2d9   :  { %2296 = vmatprep.subr.bf16.mxu1 %v2295_v48  ;;  %v1074_v48 = vld [vmem:[#allocation9 + $0x320] sm:$0xff] }
 0x324   :  { %v823_v18 = vpop.f32.mrb[6].mxu0 }
 0x325   :  { %v825_v19 = vpop.f32.mrb[7].mxu0  ;;  %v824_v20 = vadd.f32 %v823_v18, %v2867_v17  ;;  %v1076_v18 = vld [vmem:[#allocation9 + $0x330] sm:$0xff] }
 0x326   :  { %v826_v23 = vadd.f32 %v825_v19, %v2867_v17  ;;  %v1079_v19 = vld [vmem:[#allocation9 + $0x348] sm:$0xff]  ;;  %v2333_v21 = vpack.c.bf16 %v1076_v18, %v1074_v48  ;;  %v2367_v48 = vpack.c.bf16 %v1113_v13, %v1111_v12  ;;  %v1110_v18 = vld [vmem:[#allocation9 + $0x440] sm:$0xff] }
 0x327   :  { %v969_v45 = vmax.f32 %v824_v20, 0.0  ;;  %v1081_v20 = vld [vmem:[#allocation9 + $0x358] sm:$0xff] }
 0x328   :  { %v970_v25 = vmax.f32 %v826_v23, 0.0  ;;  %v2335_v22 = vpack.c.bf16 %v1081_v20, %v1079_v19  ;;  %v1078_v23 = vld [vmem:[#allocation9 + $0x340] sm:$0xff]  ;;  %v1112_v19 = vld [vmem:[#allocation9 + $0x450] sm:$0xff]  ;;  %v1115_v20 = vld [vmem:[#allocation9 + $0x468] sm:$0xff] }
 0x32a   :  { %1203 = vmatprep.mubr.f32.mxu1 %v970_v25  ;;  %v2337_v25 = vpack.c.bf16 %v1080_v24, %v1078_v23  ;;  %v1114_v24 = vld [vmem:[#allocation9 + $0x460] sm:$0xff] }
 0x32b   :  { %1204 = vmatmul.mubr.f32.vlgmr.msra.gmra.mrb[4].mxu1 %v969_v45  ;;  %v1085_v45 = vld [vmem:[#allocation9 + $0x378] sm:$0xff] }
 0x32c   :  { %2298 = vmatpush1.bf16.msra.mxu1 %v2297_v26  ;;  %v2339_v26 = vpack.c.bf16 %v1085_v45, %v1083_v42  ;;  %v1116_v42 = vld [vmem:[#allocation9 + $0x470] sm:$0xff]  ;;  %v1119_v45 = vld [vmem:[#allocation9 + $0x488] sm:$0xff] }
 0x32d   :  { %2300 = vmatprep.subr.bf16.mxu1 %v2299_v27  ;;  %v1082_v27 = vld [vmem:[#allocation9 + $0x360] sm:$0xff] }
 0x32e   :  { %v2341_v31 = vpack.c.bf16 %v1084_v28, %v1082_v27  ;;  %v1118_v28 = vld [vmem:[#allocation9 + $0x480] sm:$0xff] }
 0x330   :  { %2302 = vmatpush1.bf16.msra.mxu1 %v2301_v32  ;;  %v2343_v32 = vpack.c.bf16 %v1089_v30, %v1087_v29  ;;  %v1123_v29 = vld [vmem:[#allocation9 + $0x4a8] sm:$0xff]  ;;  %v1125_v30 = vld [vmem:[#allocation9 + $0x4b8] sm:$0xff] }
 0x331   :  { %2304 = vmatprep.subr.bf16.mxu1 %v2303_v33  ;;  %v1086_v33 = vld [vmem:[#allocation9 + $0x380] sm:$0xff] }
 0x332   :  { %v2345_v37 = vpack.c.bf16 %v1088_v34, %v1086_v33  ;;  %v1122_v33 = vld [vmem:[#allocation9 + $0x4a0] sm:$0xff]  ;;  %v1124_v34 = vld [vmem:[#allocation9 + $0x4b0] sm:$0xff] }
 0x334   :  { %2306 = vmatpush1.bf16.msra.mxu1 %v2305_v38  ;;  %v2347_v38 = vpack.c.bf16 %v1093_v36, %v1091_v35  ;;  %v2381_v35 = vpack.c.bf16 %v1124_v34, %v1122_v33  ;;  %v1127_v36 = vld [vmem:[#allocation9 + $0x4c8] sm:$0x3] }
 0x335   :  { %2308 = vmatprep.subr.bf16.mxu1 %v2307_v39  ;;  %v1090_v39 = vld [vmem:[#allocation9 + $0x3a0] sm:$0xff] }
 0x336   :  { %v2349_v46 = vpack.c.bf16 %v1092_v40, %v1090_v39  ;;  %v2877_v40 = vld [vmem:[#allocation4] sm:$0xff] }
 0x337   :  { %1615 = vst.msk [vmem:[#allocation4 + $0x8] sm:$0xff] %vm3075_vm9, %v2877_v40 }
 0x338   :  { %2310 = vmatpush1.bf16.msra.mxu1 %v2309_v47  ;;  %v2351_v47 = vpack.c.bf16 %v1097_v44, %v1095_v43 }
 0x339   :  { %2312 = vmatprep.subr.bf16.mxu1 %v2311_v49  ;;  %v1094_v49 = vld [vmem:[#allocation9 + $0x3c0] sm:$0xff] }
 0x33a   :  { %v2353_v54 = vpack.c.bf16 %v1096_v50, %v1094_v49 }
 0x33c   :  { %2314 = vmatpush1.bf16.msra.mxu1 %v2313_v55  ;;  %v2355_v55 = vpack.c.bf16 %v1101_v53, %v1099_v51 }
 0x33d   :  { %2316 = vmatprep.subr.bf16.mxu1 %v2315_v56  ;;  %v1098_v56 = vld [vmem:[#allocation9 + $0x3e0] sm:$0xff] }
 0x33e   :  { %v2357_v60 = vpack.c.bf16 %v1100_v57, %v1098_v56 }
 0x340   :  { %2318 = vmatpush1.bf16.msra.mxu1 %v2317_v62  ;;  %v2359_v62 = vpack.c.bf16 %v1105_v59, %v1103_v58 }
 0x341   :  { %2320 = vmatprep.subr.bf16.mxu1 %v2319_v63 }
 0x344   :  { %2322 = vmatpush1.bf16.msra.mxu1 %v2321_v4 }
 0x345   :  { %2324 = vmatprep.subr.bf16.mxu1 %v2323_v41  ;;  %v1107_v41 = vld [vmem:[#allocation9 + $0x428] sm:$0xff] }
 0x348   :  { %2326 = vmatpush1.bf16.msra.mxu1 %v2325_v9  ;;  %v2363_v9 = vpack.c.bf16 %v1109_v5, %v1107_v41 }
 0x349   :  { %2328 = vmatprep.subr.bf16.mxu1 %v2327_v10  ;;  %v1106_v10 = vld [vmem:[#allocation9 + $0x420] sm:$0xff] }
 0x34c   :  { %2330 = vmatpush1.bf16.msra.mxu1 %v2329_v15  ;;  %v2365_v15 = vpack.c.bf16 %v1108_v11, %v1106_v10 }
 0x34d   :  { %2332 = vmatprep.subr.bf16.mxu1 %v2331_v16 }
 0x350   :  { %2334 = vmatpush1.bf16.msra.mxu1 %v2333_v21  ;;  %v1117_v21 = vld [vmem:[#allocation9 + $0x478] sm:$0xff] }
 0x351   :  { %2336 = vmatprep.subr.bf16.mxu1 %v2335_v22  ;;  %v2369_v22 = vpack.c.bf16 %v1112_v19, %v1110_v18  ;;  %v2371_v23 = vpack.c.bf16 %v1117_v21, %v1115_v20 }
 0x354   :  { %2338 = vmatpush1.bf16.msra.mxu1 %v2337_v25  ;;  %v1121_v25 = vld [vmem:[#allocation9 + $0x498] sm:$0xff] }
 0x355   :  { %2340 = vmatprep.subr.bf16.mxu1 %v2339_v26  ;;  %v2373_v26 = vpack.c.bf16 %v1116_v42, %v1114_v24  ;;  %v2375_v27 = vpack.c.bf16 %v1121_v25, %v1119_v45  ;;  %v1470_v45 = vld [vmem:[%s3067_s2] sm:$0xff]  ;;  %s2573_s2 = smov 1  }
 0x358   :  { %2342 = vmatpush1.bf16.msra.mxu1 %v2341_v31 }
 0x359   :  { %2344 = vmatprep.subr.bf16.mxu1 %v2343_v32  ;;  %v2379_v32 = vpack.c.bf16 %v1125_v30, %v1123_v29 }
 0x35c   :  { %2346 = vmatpush1.bf16.msra.mxu1 %v2345_v37 }
 0x35d   :  { %2348 = vmatprep.subr.bf16.mxu1 %v2347_v38  ;;  %v1126_v38 = vld [vmem:[#allocation9 + $0x4c0] sm:$0x3] }
 0x360   :  { %2350 = vmatpush1.bf16.msra.mxu1 %v2349_v46  ;;  %v2570_v46 = vmov 1  }
 0x361   :  { %2352 = vmatprep.subr.bf16.mxu1 %v2351_v47  ;;  %2483 = vset.pattern.permute.xlu0 %v2570_v46  ;;  %v2902_v47 = vld [vmem:[%s3069_s4] sm:$0xff] }
 0x364   :  { %2354 = vmatpush1.bf16.msra.mxu1 %v2353_v54 }
 0x365   :  { %2356 = vmatprep.subr.bf16.mxu1 %v2355_v55 }
 0x368   :  { %2358 = vmatpush1.bf16.msra.mxu1 %v2357_v60 }
 0x369   :  { %2360 = vmatprep.subr.bf16.mxu1 %v2359_v62 }
 0x36e   :  { %v894_v63 = vpop.f32.mrb[2].mxu1 }
 0x36f   :  { %v895_v0 = vadd.f32 %v894_v63, %v2867_v17  ;;  %v896_v1 = vpop.f32.mrb[3].mxu1 }
 0x370   :  { %v897_v4 = vadd.f32 %v896_v1, %v2867_v17 }
 0x371   :  { %v971_v8 = vmax.f32 %v895_v0, 0.0 }
 0x372   :  { %v972_v6 = vmax.f32 %v897_v4, 0.0 }
 0x374   :  { %1274 = vmatprep.mubr.f32.mxu1 %v972_v6 }
 0x375   :  { %v965_v14 = vpop.f32.mrb[8].mxu0  ;;  %1275 = vmatmul.mubr.f32.vlgmr.msra.gmra.mrb[4].mxu1 %v971_v8 }
 0x376   :  { %2362 = vmatpush1.bf16.msra.mxu1 %v2361_v7  ;;  %v2016_v16 = vpop.f32.mrb[9].mxu0  ;;  %1345 = vmatprep.mubr.f32.mxu1 %v2561_v61  ;;  %v1120_v61 = vld [vmem:[#allocation9 + $0x490] sm:$0xff]  ;;  %v966_v37 = vadd.f32 %v965_v14, %v2867_v17 }
 0x377   :  { %2364 = vmatprep.subr.bf16.mxu1 %v2363_v9  ;;  %v2377_v31 = vpack.c.bf16 %v1120_v61, %v1118_v28 }
 0x378   :  { %v973_v39 = vmax.f32 %v966_v37, 0.0 }
 0x37a   :  { %2366 = vmatpush1.bf16.msra.mxu1 %v2365_v15 }
 0x37b   :  { %2368 = vmatprep.subr.bf16.mxu1 %v2367_v48 }
 0x37e   :  { %2370 = vmatpush1.bf16.msra.mxu1 %v2369_v22 }
 0x37f   :  { %2372 = vmatprep.subr.bf16.mxu1 %v2371_v23 }
 0x382   :  { %2374 = vmatpush1.bf16.msra.mxu1 %v2373_v26  ;;  %v1357_v26 = vlaneseq }
 0x383   :  { %2376 = vmatprep.subr.bf16.mxu1 %v2375_v27 }
 0x384   :  { %v1358_v27 = vand.u32 127, %v1357_v26 }
 0x386   :  { %2378 = vmatpush1.bf16.msra.mxu1 %v2377_v31  ;;  %v1359_v28 = vadd.s32 128, %v1358_v27  ;;  %v1360_v61 = vcvt.s32.f32 %v1358_v27 }
 0x387   :  { %2380 = vmatprep.subr.bf16.mxu1 %v2379_v32 }
 0x388   :  { %v1361_v29 = vcvt.s32.f32 %v1359_v28  ;;  %v1363_v30 = vmul.f32 0.01, %v1360_v61 }
 0x38a   :  { %2382 = vmatpush1.bf16.msra.mxu1 %v2381_v35  ;;  %v1364_v31 = vmul.f32 0.01, %v1361_v29  ;;  %v1365_v32 = vfloor.f32 %v1363_v30 }
 0x38b   :  { %1921 = vmatprep.subr.msk.mxu1 %vm3074_vm4, %v1127_v36 }
 0x38c   :  { %v1366_v33 = vfloor.f32 %v1364_v31  ;;  %v1367_v34 = vmul.f32 100.0, %v1365_v32 }
 0x38e   :  { %1922 = vmatpush1.msk.msra.mxu1 %vm3074_vm4, %v1126_v38  ;;  %v1368_v35 = vmul.f32 100.0, %v1366_v33  ;;  %v1369_v36 = vsub.f32 %v1360_v61, %v1367_v34  ;;  %v2575_v33 = vmov 4  }
 0x38f   :  { %1923 = vmatmul.mubr.msk.f32.vlgmr.msra.gmra.mrb[4].mxu1 %vm1128_vm7, %v973_v39 }
 0x390   :  { %v1370_v37 = vsub.f32 %v1361_v29, %v1368_v35  ;;  %v1372_v38 = vmul.f32 0.1, %v1369_v36 }
 0x392   :  { %v1373_v39 = vmul.f32 0.1, %v1370_v37 }
 0x462   :  { %v1347_v43 = vpop.f32.mrb[4].mxu1 }
 0x463   :  { %v1349_v44 = vpop.f32.mrb[5].mxu1  ;;  %1393 = vrot.lane.b32.xlu0 %v1347_v43, %s2553_s17 }
 0x464   :  { %1354 = vst.msk [vmem:[#allocation3 + $0x8] sm:$0xff] %vm3075_vm9, %v1349_v44  ;;  %v1375_v44 = vfloor.f32 %v1373_v39 }
 0x466   :  { %v1377_v46 = vmul.f32 10.0, %v1375_v44  ;;  %vm1381_vm2 = vcmp.lt.f32.partialorder %v1375_v44, 8.0 }
 0x467   :  { %1402 = vrot.lane.b32.xlu0 %v1347_v43, %s2555_s19 }
 0x46b   :  { %v1356_v17 = vld [vmem:[#allocation3 + $0x8] sm:$0xff]  ;;  %1411 = vrot.lane.b32.xlu0 %v1347_v43, %s2565_s1 }
 0x46c   :  { %1395 = vrot.lane.b32.xlu1 %v1356_v17, %s2553_s17  ;;  %1390 = vst.msk [vmem:[#allocation6 + $0x8] sm:$0xff] %vm1389_vm10, %v1356_v17 }
 0x46f   :  { %1421 = vrot.lane.b32.xlu0 %v1347_v43, %s2566_s5 }
 0x470   :  { %1404 = vrot.lane.b32.xlu1 %v1356_v17, %s2555_s19 }
 0x473   :  { %1431 = vrot.lane.b32.xlu0 %v1347_v43, %s2567_s28  ;;  %v1472_v57 = vld [vmem:[#allocation6 + $0x8] sm:$0xff] }
 0x474   :  { %1413 = vrot.lane.b32.xlu1 %v1356_v17, %s2565_s1 }
 0x477   :  { %1441 = vrot.lane.b32.xlu0 %v1347_v43, %s2556_s20 }
 0x478   :  { %1423 = vrot.lane.b32.xlu1 %v1356_v17, %s2566_s5 }
 0x47b   :  { %1450 = vrot.lane.b32.xlu0 %v1347_v43, %s2568_s30 }
 0x47c   :  { %1433 = vrot.lane.b32.xlu1 %v1356_v17, %s2567_s28 }
 0x47f   :  { %1460 = vrot.lane.b32.xlu0 %v1347_v43, %s2569_s9 }
 0x480   :  { %1443 = vrot.lane.b32.xlu1 %v1356_v17, %s2556_s20 }
 0x483   :  { %1490 = vperm.xlu0 %2483, %v2902_v47  }
 0x484   :  { %1452 = vrot.lane.b32.xlu1 %v1356_v17, %s2568_s30 }
 0x488   :  { %1462 = vrot.lane.b32.xlu1 %v1356_v17, %s2569_s9 }
 0x4d5   :  { %v1394_v49 = vpop.permute.xlu0 %1393 }
 0x4d9   :  { %v1403_v51 = vpop.permute.xlu0 %1402 }
 0x4dd   :  { %v1412_v54 = vpop.permute.xlu0 %1411 }
 0x4de   :  { %v1396_v50 = vpop.permute.xlu1 %1395 }
 0x4df   :  { %1401 = vst.msk [vmem:[#allocation6 + $0x18] sm:$0xff] %vm1389_vm10, %v1396_v50  ;;  %v1397_v55 = vsel %vm506_vm6, %v1394_v49, %v1396_v50  ;;  %v1379_v50 = vsub.f32 %v1370_v37, %v1377_v46 }
 0x4e0   :  { %v2385_v60 = vpack.c.bf16 %v1397_v55, %v1347_v43  ;;  %v1374_v43 = vfloor.f32 %v1372_v38 }
 0x4e1   :  { %v1422_v62 = vpop.permute.xlu0 %1421  ;;  %vm1383_vm3 = vcmp.lt.f32.partialorder %v1379_v50, 8.0 }
 0x4e2   :  { %v1405_v53 = vpop.permute.xlu1 %1404  ;;  %v1376_v17 = vmul.f32 10.0, %v1374_v43  ;;  %vm1380_vm0 = vcmp.lt.f32.partialorder %v1374_v43, 8.0  ;;  %vm1385_vm4 = vmand %vm1381_vm2, %vm1383_vm3 }
 0x4e3   :  { %1410 = vst.msk [vmem:[#allocation6 + $0x28] sm:$0xff] %vm1389_vm10, %v1405_v53  ;;  %v1406_v4 = vsel %vm532_vm5, %v1403_v51, %v1405_v53 }
 0x4e4   :  { %v1378_v49 = vsub.f32 %v1369_v36, %v1376_v17 }
 0x4e5   :  { %v1432_v5 = vpop.permute.xlu0 %1431 }
 0x4e6   :  { %v1414_v56 = vpop.permute.xlu1 %1413  ;;  %v1474_v58 = vld [vmem:[#allocation6 + $0x18] sm:$0xff]  ;;  %vm1382_vm1 = vcmp.lt.f32.partialorder %v1378_v49, 8.0 }
 0x4e7   :  { %1420 = vst.msk [vmem:[#allocation6 + $0x38] sm:$0xff] %vm1389_vm10, %v1414_v56  ;;  %v2383_v59 = vpack.c.bf16 %v1474_v58, %v1472_v57  ;;  %v1416_v0 = vsel %vm1415_vm11, %v1412_v54, %v1414_v56  ;;  %vm1384_vm7 = vmand %vm1380_vm0, %vm1382_vm1 }
 0x4e8   :  { %v2389_v6 = vpack.c.bf16 %v1416_v0, %v1406_v4  ;;  %v1386_v58 = vsel %vm1384_vm7, 1.0, %v2877_v40 }
 0x4e9   :  { %2384 = vmatprep.subr.bf16.mxu0 %v2383_v59  ;;  %v1442_v9 = vpop.permute.xlu0 %1441 }
 0x4ea   :  { %v2909_v63 = vpop.permute.xlu1 %1423  ;;  %2386 = vmatpush1.bf16.msra.mxu0 %v2385_v60  ;;  %v1476_v2 = vld [vmem:[#allocation6 + $0x28] sm:$0xff]  ;;  %v1387_v60 = vsel %vm1385_vm4, 1.0, %v2877_v40  ;;  %vm1626_vm4 = vcmask 1047640  }
 0x4eb   :  { %1430 = vst.msk [vmem:[#allocation6 + $0x48] sm:$0xff] %vm1389_vm10, %v2909_v63  ;;  %v2920_v13 = vsel %vm1425_vm13, %v1422_v62, %v2909_v63 }
 0x4ed   :  { %v1451_v48 = vpop.permute.xlu0 %1450 }
 0x4ee   :  { %v1434_v1 = vpop.permute.xlu1 %1433  ;;  %v1478_v3 = vld [vmem:[#allocation6 + $0x38] sm:$0xff] }
 0x4ef   :  { %1440 = vst.msk [vmem:[#allocation6 + $0x58] sm:$0xff] %vm1389_vm10, %v1434_v1  ;;  %v2387_v41 = vpack.c.bf16 %v1478_v3, %v1476_v2  ;;  %v1436_v8 = vsel %vm1435_vm12, %v1432_v5, %v1434_v1 }
 0x4f0   :  { %v2393_v15 = vpack.c.bf16 %v1436_v8, %v2920_v13  ;;  %v2571_v8 = vmov 2  }
 0x4f1   :  { %2388 = vmatprep.subr.bf16.mxu0 %v2387_v41  ;;  %v1461_v42 = vpop.permute.xlu0 %1460  ;;  %2484 = vset.pattern.permute.xlu0 %v2571_v8 }
 0x4f2   :  { %v1444_v7 = vpop.permute.xlu1 %1443  ;;  %2390 = vmatpush1.bf16.msra.mxu0 %v2389_v6  ;;  %v1480_v11 = vld [vmem:[#allocation6 + $0x48] sm:$0xff] }
 0x4f3   :  { %1449 = vst.msk [vmem:[#allocation6 + $0x68] sm:$0xff] %vm1389_vm10, %v1444_v7  ;;  %v1445_v21 = vsel %vm607_vm8, %v1442_v9, %v1444_v7 }
 0x4f6   :  { %v1453_v10 = vpop.permute.xlu1 %1452  ;;  %v1482_v12 = vld [vmem:[#allocation6 + $0x58] sm:$0xff] }
 0x4f7   :  { %1459 = vst.msk [vmem:[#allocation6 + $0x78] sm:$0xff] %vm1389_vm10, %v1453_v10  ;;  %v2391_v14 = vpack.c.bf16 %v1482_v12, %v1480_v11  ;;  %v1455_v18 = vsel %vm1454_vm14, %v1451_v48, %v1453_v10  ;;  %v2572_v48 = vmov 3  }
 0x4f8   :  { %v2397_v23 = vpack.c.bf16 %v1455_v18, %v1445_v21  ;;  %2485 = vset.pattern.permute.xlu1 %v2572_v48  ;;  %v1807_v48 = vld [vmem:[%s3072_s7] sm:$0xff] }
 0x4f9   :  { %2392 = vmatprep.subr.bf16.mxu0 %v2391_v14 }
 0x4fa   :  { %v1463_v16 = vpop.permute.xlu1 %1462  ;;  %2394 = vmatpush1.bf16.msra.mxu0 %v2393_v15  ;;  %v1484_v19 = vld [vmem:[#allocation6 + $0x68] sm:$0xff] }
 0x4fb   :  { %1469 = vst.msk [vmem:[#allocation6 + $0x88] sm:$0xff] %vm1389_vm10, %v1463_v16  ;;  %v1465_v25 = vsel %vm3076_vm15, %v1461_v42, %v1463_v16 }
 0x4fe   :  { %v1486_v20 = vld [vmem:[#allocation6 + $0x78] sm:$0xff] }
 0x4ff   :  { %v2395_v22 = vpack.c.bf16 %v1486_v20, %v1484_v19 }
 0x501   :  { %2396 = vmatprep.subr.bf16.mxu0 %v2395_v22 }
 0x502   :  { %2398 = vmatpush1.bf16.msra.mxu0 %v2397_v23  ;;  %v1488_v24 = vld [vmem:[#allocation6 + $0x88] sm:$0xff]  ;;  %v1491_v51 = vpop.permute.xlu0 %1490 }
 0x503   :  { %1512 = vmatprep.subr.mxu0 %v1488_v24 }
 0x506   :  { %1513 = vmatpush1.msra.mxu0 %v1465_v25 }
 0x507   :  { %1924 = vmatmul.mubr.msk.f32.vlgmr.msra.gmra.mrb[10].mxu0 %vm3075_vm9, %v1470_v45 }
 0x508   :  { %1798 = vmatprep.mubr.f32.mxu0 %v2877_v40 }
 0x5da   :  { %v1562_v53 = vpop.f32.mrb[10].mxu0 }
 0x5db   :  { %v1563_v54 = vadd.f32 %v1562_v53, %v1491_v51  ;;  %v1564_v55 = vpop.f32.mrb[11].mxu0 }
 0x5dc   :  { %v1565_v56 = vadd.f32 %v1564_v55, %v1491_v51 }
 0x5dd   :  { %vm1567_vm9 = vcmp.gt.f32.partialorder %v1563_v54, 0.0  ;;  %v1569_v57 = vmul.f32 0.01, %v1563_v54 }
 0x5de   :  { %vm1568_vm15 = vcmp.gt.f32.partialorder %v1565_v56, 0.0  ;;  %v1570_v59 = vmul.f32 0.01, %v1565_v56 }
 0x5df   :  { %v1571_v62 = vsel %vm1567_vm9, %v1563_v54, %v1569_v57  ;;  %vm1622_vm9 = vcmask 89088  }
 0x5e0   :  { %v1572_v0 = vsel %vm1568_vm15, %v1565_v56, %v1570_v59  ;;  %v1573_v1 = vmul.f32 %v1571_v62, %v1386_v58  ;;  %vm1628_vm15 = vcmask 498688  }
 0x5e1   :  { %v1574_v2 = vmul.f32 %v1572_v0, %v1387_v60 }
 0x5e2   :  { %v1580_v5 = vmul.f32 %v1573_v1, %v1571_v62 }
 0x5e3   :  { %v1575_v3 = vsel %vm1389_vm10, %v1574_v2, 0.0  ;;  %v1581_v4 = vmul.f32 %v1574_v2, %v1572_v0 }
 0x5e4   :  { %v1576_v41 = vadd.f32 %v1575_v3, %v1573_v1 }
 0x5e5   :  { %v1582_v6 = vsel %vm1389_vm10, %v1581_v4, 0.0 }
 0x5e6   :  { %1577 = vadd.xlane.f32.xlu1 %v1576_v41  ;;  %v1583_v7 = vadd.f32 %v1582_v6, %v1580_v5 }
 0x5e8   :  { %1584 = vadd.xlane.f32.xlu0 %v1583_v7 }
 0x673   :  { %v1578_v9 = vpop.xlane.xlu1 %1577 }
 0x674   :  { %v1579_v10 = vmul.f32 0.0078125, %v1578_v9 }
 0x675   :  { %v1585_v11 = vpop.xlane.xlu0 %1584 }
 0x676   :  { %v1587_v12 = vmul.f32 %v1579_v10, %v1579_v10  ;;  %v1586_v14 = vmul.f32 0.0078125, %v1585_v11 }
 0x678   :  { %v1588_v15 = vsub.f32 %v1586_v14, %v1587_v12 }
 0x67a   :  { %v1589_v16 = vadd.f32 1e-05, %v1588_v15 }
 0x67c   :  { %2492 = vrsqrt.f32 %v1589_v16 }
 0x686   :  { %v2493_v18 = vpop.eup %2492 }
 0x687   :  { %v1591_v19 = vmul.f32 %v2902_v47, %v2493_v18  ;;  %v1808_v18 = vld [vmem:[%s3072_s7 + $0x8] sm:$0xff] }
 0x689   :  { %1600 = vperm.xlu0 %2484, %v1591_v19   ;;  %v1592_v20 = vmul.f32 %v1591_v19, %v1579_v10 }
 0x68b   :  { %1594 = vrot.lane.b32.xlu1 %v1592_v20, %s2573_s2  ;;  %v1708_v20 = vld [vmem:[%s3068_s3] sm:$0xff] }
 0x68d   :  { %2487 = vset.pattern.permute.xlu0 %v2575_v33 }
 0x6fd   :  { %v1595_v21 = vpop.permute.xlu1 %1594 }
 0x6fe   :  { %v1597_v22 = vsub.f32 %v2902_v47, %v1595_v21  ;;  %v2416_v21 = vpack.c.bf16 %v1808_v18, %v1807_v48 }
 0x700   :  { %1607 = vperm.xlu1 %2485, %v1597_v22   ;;  %v1809_v22 = vld [vmem:[%s3072_s7 + $0x10] sm:$0xff] }
 0x704   :  { %2486 = vset.pattern.permute.xlu1 %v2575_v33 }
 0x708   :  { %v1601_v23 = vpop.permute.xlu0 %1600 }
 0x709   :  { %v1603_v24 = vmul.f32 %v1601_v23, %v1571_v62  ;;  %v1604_v45 = vmul.f32 %v1601_v23, %v1572_v0  ;;  %v1810_v23 = vld [vmem:[%s3072_s7 + $0x18] sm:$0xff] }
 0x77f   :  { %v1608_v42 = vpop.permute.xlu1 %1607 }
 0x780   :  { %v1610_v25 = vadd.f32 %v1608_v42, %v1603_v24  ;;  %v1611_v26 = vadd.f32 %v1608_v42, %v1604_v45  ;;  %v2419_v24 = vpack.c.bf16 %v1810_v23, %v1809_v22  ;;  %v1811_v42 = vld [vmem:[%s3072_s7 + $0x20] sm:$0xff]  ;;  %v1812_v45 = vld [vmem:[%s3072_s7 + $0x28] sm:$0xff] }
 0x782   :  { %v1612_v27 = vmul.f32 %v1610_v25, %v1386_v58  ;;  %v1613_v28 = vmul.f32 %v1611_v26, %v1387_v60  ;;  %v2422_v25 = vpack.c.bf16 %v1812_v45, %v1811_v42  ;;  %v1813_v26 = vld [vmem:[%s3072_s7 + $0x30] sm:$0xff] }
 0x784   :  { %1618 = vrot.lane.b32.xlu1 %v1612_v27, %s2574_s12  ;;  %v1814_v27 = vld [vmem:[%s3072_s7 + $0x38] sm:$0xff] }
 0x788   :  { %1620 = vrot.lane.b32.xlu1 %v1613_v28, %s2574_s12  ;;  %v2425_v28 = vpack.c.bf16 %v1814_v27, %v1813_v26 }
 0x7f6   :  { %v1619_v61 = vpop.permute.xlu1 %1618 }
 0x7f7   :  { %1627 = vst.msk [vmem:[#allocation4] sm:$0xff] %vm1626_vm4, %v1619_v61 }
 0x7fa   :  { %v1621_v29 = vpop.permute.xlu1 %1620 }
 0x7fb   :  { %v1623_v30 = vsel %vm1622_vm9, %v1619_v61, %v1621_v29  ;;  %v1815_v61 = vld [vmem:[%s3072_s7 + $0x40] sm:$0xff]  ;;  %v1816_v29 = vld [vmem:[%s3072_s7 + $0x48] sm:$0xff] }
 0x7fc   :  { %1629 = vst.msk [vmem:[#allocation4 + $0x8] sm:$0xff] %vm1628_vm15, %v1623_v30  ;;  %v2428_v30 = vpack.c.bf16 %v1816_v29, %v1815_v61 }
 0x7fe   :  { %v1630_v31 = vld [vmem:[#allocation4] sm:$0xff] }
 0x7ff   :  { %1636 = vrot.lane.b32.xlu1 %v1630_v31, %s2553_s17 }
 0x803   :  { %1645 = vrot.lane.b32.xlu1 %v1630_v31, %s2555_s19  ;;  %v1631_v32 = vld [vmem:[#allocation4 + $0x8] sm:$0xff] }
 0x804   :  { %1656 = vrot.lane.b32.xlu0 %v1631_v32, %s2565_s1  ;;  %1633 = vst.msk [vmem:[#allocation6 + $0x8] sm:$0xff] %vm1389_vm10, %v1631_v32 }
 0x807   :  { %1654 = vrot.lane.b32.xlu1 %v1630_v31, %s2565_s1 }
 0x808   :  { %1665 = vrot.lane.b32.xlu0 %v1631_v32, %s2566_s5 }
 0x80b   :  { %1663 = vrot.lane.b32.xlu1 %v1630_v31, %s2566_s5  ;;  %v1710_v58 = vld [vmem:[#allocation6 + $0x8] sm:$0xff] }
 0x80c   :  { %1674 = vrot.lane.b32.xlu0 %v1631_v32, %s2567_s28 }
 0x80f   :  { %1672 = vrot.lane.b32.xlu1 %v1630_v31, %s2567_s28 }
 0x810   :  { %1683 = vrot.lane.b32.xlu0 %v1631_v32, %s2556_s20 }
 0x813   :  { %1638 = vrot.lane.b32.xlu1 %v1631_v32, %s2553_s17 }
 0x814   :  { %1692 = vrot.lane.b32.xlu0 %v1631_v32, %s2568_s30 }
 0x817   :  { %1647 = vrot.lane.b32.xlu1 %v1631_v32, %s2555_s19 }
 0x818   :  { %1701 = vrot.lane.b32.xlu0 %v1631_v32, %s2569_s9  ;;  %v1818_v32 = vld [vmem:[%s3072_s7 + $0x58] sm:$0xff] }
 0x81b   :  { %1681 = vrot.lane.b32.xlu1 %v1630_v31, %s2556_s20 }
 0x81f   :  { %1690 = vrot.lane.b32.xlu1 %v1630_v31, %s2568_s30 }
 0x823   :  { %1699 = vrot.lane.b32.xlu1 %v1630_v31, %s2569_s9 }
 0x827   :  { %1728 = vperm.xlu1 %2486, %v2902_v47  }
 0x871   :  { %v1637_v34 = vpop.permute.xlu1 %1636 }
 0x875   :  { %v1646_v35 = vpop.permute.xlu1 %1645 }
 0x876   :  { %v1657_v36 = vpop.permute.xlu0 %1656 }
 0x877   :  { %1662 = vst.msk [vmem:[#allocation6 + $0x38] sm:$0xff] %vm1389_vm10, %v1657_v36 }
 0x879   :  { %v1655_v37 = vpop.permute.xlu1 %1654 }
 0x87a   :  { %v1658_v38 = vsel %vm1415_vm11, %v1655_v37, %v1657_v36  ;;  %v1666_v39 = vpop.permute.xlu0 %1665  ;;  %v1821_v37 = vld [vmem:[%s3072_s7 + $0x70] sm:$0xff] }
 0x87b   :  { %1671 = vst.msk [vmem:[#allocation6 + $0x48] sm:$0xff] %vm1389_vm10, %v1666_v39 }
 0x87d   :  { %v1664_v43 = vpop.permute.xlu1 %1663 }
 0x87e   :  { %v1667_v44 = vsel %vm1425_vm13, %v1664_v43, %v1666_v39  ;;  %v1675_v17 = vpop.permute.xlu0 %1674  ;;  %v1716_v3 = vld [vmem:[#allocation6 + $0x38] sm:$0xff]  ;;  %v1823_v43 = vld [vmem:[%s3072_s7 + $0x80] sm:$0xff] }
 0x87f   :  { %1680 = vst.msk [vmem:[#allocation6 + $0x58] sm:$0xff] %vm1389_vm10, %v1675_v17 }
 0x881   :  { %v1673_v46 = vpop.permute.xlu1 %1672 }
 0x882   :  { %v1676_v47 = vsel %vm1435_vm12, %v1673_v46, %v1675_v17  ;;  %v1684_v49 = vpop.permute.xlu0 %1683  ;;  %v1718_v7 = vld [vmem:[#allocation6 + $0x48] sm:$0xff]  ;;  %v1825_v46 = vld [vmem:[%s3072_s7 + $0x90] sm:$0xff] }
 0x883   :  { %1689 = vst.msk [vmem:[#allocation6 + $0x68] sm:$0xff] %vm1389_vm10, %v1684_v49  ;;  %v2409_v12 = vpack.c.bf16 %v1676_v47, %v1667_v44  ;;  %v1824_v44 = vld [vmem:[%s3072_s7 + $0x88] sm:$0xff]  ;;  %v1826_v47 = vld [vmem:[%s3072_s7 + $0x98] sm:$0xff] }
 0x884   :  { %v2440_v17 = vpack.c.bf16 %v1824_v44, %v1823_v43 }
 0x885   :  { %v1639_v50 = vpop.permute.xlu1 %1638 }
 0x886   :  { %v1640_v51 = vsel %vm506_vm6, %v1637_v34, %v1639_v50  ;;  %1644 = vst.msk [vmem:[#allocation6 + $0x18] sm:$0xff] %vm1389_vm10, %v1639_v50  ;;  %v1693_v53 = vpop.permute.xlu0 %1692  ;;  %v1720_v4 = vld [vmem:[#allocation6 + $0x58] sm:$0xff]  ;;  %vm3078_vm6 = vcmask 588800   ;;  %v1819_v34 = vld [vmem:[%s3072_s7 + $0x60] sm:$0xff] }
 0x887   :  { %1698 = vst.msk [vmem:[#allocation6 + $0x78] sm:$0xff] %vm1389_vm10, %v1693_v53  ;;  %v2401_v0 = vpack.c.bf16 %v1640_v51, %v1630_v31  ;;  %v2407_v8 = vpack.c.bf16 %v1720_v4, %v1718_v7  ;;  %v1817_v31 = vld [vmem:[%s3072_s7 + $0x50] sm:$0xff]  ;;  %v1827_v50 = vld [vmem:[%s3072_s7 + $0xa0] sm:$0xff]  ;;  %v1828_v51 = vld [vmem:[%s3072_s7 + $0xa8] sm:$0xff] }
 0x888   :  { %v2431_v33 = vpack.c.bf16 %v1818_v32, %v1817_v31 }
 0x889   :  { %v1648_v54 = vpop.permute.xlu1 %1647 }
 0x88a   :  { %v1649_v55 = vsel %vm532_vm5, %v1646_v35, %v1648_v54  ;;  %1653 = vst.msk [vmem:[#allocation6 + $0x28] sm:$0xff] %vm1389_vm10, %v1648_v54  ;;  %v1702_v56 = vpop.permute.xlu0 %1701  ;;  %vm3077_vm5 = vcmask 867328   ;;  %v1722_v14 = vld [vmem:[#allocation6 + $0x68] sm:$0xff]  ;;  %v1829_v54 = vld [vmem:[%s3072_s7 + $0xb0] sm:$0x3] }
 0x88b   :  { %1707 = vst.msk [vmem:[#allocation6 + $0x88] sm:$0xff] %vm1389_vm10, %v1702_v56  ;;  %v2405_v6 = vpack.c.bf16 %v1658_v38, %v1649_v55  ;;  %v1820_v35 = vld [vmem:[%s3072_s7 + $0x68] sm:$0xff]  ;;  %v1822_v38 = vld [vmem:[%s3072_s7 + $0x78] sm:$0xff] }
 0x88c   :  { %v2434_v36 = vpack.c.bf16 %v1820_v35, %v1819_v34  ;;  %v2437_v39 = vpack.c.bf16 %v1822_v38, %v1821_v37 }
 0x88d   :  { %v1682_v57 = vpop.permute.xlu1 %1681  ;;  %v1712_v59 = vld [vmem:[#allocation6 + $0x18] sm:$0xff] }
 0x88e   :  { %v1685_v60 = vsel %vm607_vm8, %v1682_v57, %v1684_v49  ;;  %v2399_v62 = vpack.c.bf16 %v1712_v59, %v1710_v58  ;;  %v1724_v10 = vld [vmem:[#allocation6 + $0x78] sm:$0xff]  ;;  %v2443_v49 = vpack.c.bf16 %v1826_v47, %v1825_v46  ;;  %vm3079_vm8 = vcmask 1041408  }
 0x88f   :  { %v2411_v15 = vpack.c.bf16 %v1724_v10, %v1722_v14 }
 0x890   :  { %2400 = vmatprep.subr.bf16.mxu0 %v2399_v62 }
 0x891   :  { %2402 = vmatpush1.bf16.msra.mxu0 %v2401_v0  ;;  %v1691_v1 = vpop.permute.xlu1 %1690  ;;  %v1714_v2 = vld [vmem:[#allocation6 + $0x28] sm:$0xff] }
 0x892   :  { %v1694_v41 = vsel %vm1454_vm14, %v1691_v1, %v1693_v53  ;;  %v2403_v5 = vpack.c.bf16 %v1716_v3, %v1714_v2  ;;  %v1726_v19 = vld [vmem:[#allocation6 + $0x88] sm:$0xff]  ;;  %v2446_v53 = vpack.c.bf16 %v1828_v51, %v1827_v50 }
 0x893   :  { %v2413_v16 = vpack.c.bf16 %v1694_v41, %v1685_v60 }
 0x894   :  { %2404 = vmatprep.subr.bf16.mxu0 %v2403_v5 }
 0x895   :  { %2406 = vmatpush1.bf16.msra.mxu0 %v2405_v6  ;;  %v1700_v9 = vpop.permute.xlu1 %1699 }
 0x896   :  { %v1703_v11 = vsel %vm3077_vm5, %v1700_v9, %v1702_v56  ;;  %2408 = vmatprep.subr.bf16.mxu0 %v2407_v8 }
 0x899   :  { %2410 = vmatpush1.bf16.msra.mxu0 %v2409_v12 }
 0x89a   :  { %2412 = vmatprep.subr.bf16.mxu0 %v2411_v15 }
 0x89d   :  { %2414 = vmatpush1.bf16.msra.mxu0 %v2413_v16 }
 0x89e   :  { %1750 = vmatprep.subr.mxu0 %v1726_v19 }
 0x8a1   :  { %1751 = vmatpush1.msra.mxu0 %v1703_v11 }
 0x8a2   :  { %1925 = vmatmul.mubr.msk.f32.vlgmr.msra.gmra.mrb[12].mxu0 %vm3078_vm6, %v1708_v20  ;;  %2415 = vmatprep.subr.bf16.mxu0 %v2563_v52 }
 0x8a3   :  { %2417 = vmatpush1.bf16.msra.mxu0 %v2416_v21 }
 0x8a4   :  { %2418 = vmatprep.subr.bf16.mxu0 %v2563_v52 }
 0x8a6   :  { %v1729_v55 = vpop.permute.xlu1 %1728 }
 0x8a7   :  { %2420 = vmatpush1.bf16.msra.mxu0 %v2419_v24 }
 0x8a8   :  { %2421 = vmatprep.subr.bf16.mxu0 %v2563_v52 }
 0x8ab   :  { %2423 = vmatpush1.bf16.msra.mxu0 %v2422_v25 }
 0x8ac   :  { %2424 = vmatprep.subr.bf16.mxu0 %v2563_v52 }
 0x8af   :  { %2426 = vmatpush1.bf16.msra.mxu0 %v2425_v28 }
 0x8b0   :  { %2427 = vmatprep.subr.bf16.mxu0 %v2563_v52 }
 0x8b3   :  { %2429 = vmatpush1.bf16.msra.mxu0 %v2428_v30 }
 0x8b4   :  { %2430 = vmatprep.subr.bf16.mxu0 %v2563_v52 }
 0x8b7   :  { %2432 = vmatpush1.bf16.msra.mxu0 %v2431_v33 }
 0x8b8   :  { %2433 = vmatprep.subr.bf16.mxu0 %v2563_v52 }
 0x8bb   :  { %2435 = vmatpush1.bf16.msra.mxu0 %v2434_v36 }
 0x8bc   :  { %2436 = vmatprep.subr.bf16.mxu0 %v2563_v52 }
 0x8bf   :  { %2438 = vmatpush1.bf16.msra.mxu0 %v2437_v39 }
 0x8c0   :  { %2439 = vmatprep.subr.bf16.mxu0 %v2563_v52 }
 0x8c3   :  { %2441 = vmatpush1.bf16.msra.mxu0 %v2440_v17 }
 0x8c4   :  { %2442 = vmatprep.subr.bf16.mxu0 %v2563_v52 }
 0x8c7   :  { %2444 = vmatpush1.bf16.msra.mxu0 %v2443_v49 }
 0x8c8   :  { %2445 = vmatprep.subr.bf16.mxu0 %v2563_v52 }
 0x8cb   :  { %2447 = vmatpush1.bf16.msra.mxu0 %v2446_v53 }
 0x8cc   :  { %1880 = vmatprep.subr.mxu0 %v2877_v40 }
 0x8cf   :  { %1926 = vmatpush1.msk.msra.mxu0 %vm3079_vm8, %v1829_v54 }
 0x975   :  { %v1800_v52 = vpop.f32.mrb[12].mxu0 }
 0x976   :  { %v1801_v56 = vadd.f32 %v1800_v52, %v1729_v55  ;;  %v1802_v57 = vpop.f32.mrb[13].mxu0 }
 0x977   :  { %v1803_v58 = vadd.f32 %v1802_v57, %v1729_v55 }
 0x978   :  { %v1805_v60 = vadd.f32 %v1801_v56, %v2920_v13 }
 0x979   :  { %v1806_v59 = vadd.f32 %v1803_v58, %v2909_v63 }
 0x97b   :  { %1927 = vmatprep.mubr.msk.f32.mxu0 %vm1389_vm10, %v1806_v59 }
 0x97c   :  { %1901 = vmatmul.mubr.f32.vlgmr.msra.gmra.mrb[14].mxu0 %v1805_v60 }
 0xa4f   :  { %v1902_v62 = vpop.f32.mrb[14].mxu0 }
 0xa50   :  { %1906 = vst [vmem:[%s3073_s8] sm:$0xff] %v1902_v62  ;;  %v1904_v40 = vpop.f32.mrb[15].mxu0 }
 0xa51   :  { %1911 = vsyncpa [#allocation8], 1 }
 0xa52   :  { %1912 = vsyncpa [#allocation10], 1 }

</bundles_post_ra>
